<compile_context>
chip_gen: v7x
topology: tpu7x:2x2x1
jax: 0.10.0
libtpu: 0.0.40
codegen_flags: <defaults>
</compile_context>

<pallas_src>
import functools
import math

import jax
import jax.numpy as jnp
from jax.experimental import pallas as pl
from jax.experimental.pallas import tpu as pltpu


# ----------------------------- fused Pallas kernel ---------------------------

def _block_kernel(tcr_ref, epi_ref, w_in_ref, w_out_ref, w_f1_ref, w_f2_ref,
                  b_in_ref, b_f1_ref, vec_ref, tcr_o_ref, epi_o_ref,
                  *, num_heads):
    St, D = tcr_ref.shape            # batch dim is squeezed by the BlockSpec
    Se = epi_ref.shape[0]
    H = num_heads
    hd = D // H
    scale = 1.0 / math.sqrt(hd)

    tcr = tcr_ref[...]               # (St, D) f32
    epi = epi_ref[...]               # (Se, D) f32
    b_in = b_in_ref[...]             # (3, 3D)  fused [bq|bk|bv] per attention
    vec = vec_ref[...]               # (10, D)  ln_g(3) | ln_b(3) | bo(3) | ffn b2

    # Head-selection mask (H, 1, D): 1.0 where lane d belongs to head h.
    lane = jax.lax.broadcasted_iota(jnp.int32, (H, 1, D), 2)
    head = jax.lax.broadcasted_iota(jnp.int32, (H, 1, D), 0)
    head_mask = ((lane >= head * hd) & (lane < (head + 1) * hd)).astype(jnp.float32)

    def layernorm(x, idx):
        g = vec[idx:idx + 1, :]                       # (1, D)
        b = vec[3 + idx:4 + idx, :]
        mu = jnp.mean(x, axis=-1, keepdims=True)      # single pass over x:
        ms = jnp.mean(x * x, axis=-1, keepdims=True)  # var = E[x^2] - E[x]^2
        var = ms - mu * mu
        return (x - mu) * jax.lax.rsqrt(var + 1e-5) * g + b

    def mha(xq, xkv, idx):
        Sq = xq.shape[0]
        w_qkv = w_in_ref[idx]                         # (D, 3D) fused [Wq|Wk|Wv]
        b_qkv = b_in[idx:idx + 1, :]                  # (1, 3D)
        pq = jnp.dot(xq, w_qkv, preferred_element_type=jnp.float32) + b_qkv
        if xkv is xq:                                 # self-attention: 1 projection
            pkv = pq
        else:                                         # cross: project kv stream too
            pkv = jnp.dot(xkv, w_qkv, preferred_element_type=jnp.float32) + b_qkv
        q = pq[:, :D]
        k = pkv[:, D:2 * D]
        v = pkv[:, 2 * D:]

        # All heads at once: row (h, i) of q_blk is q[i] masked to head h's
        # lanes, so a single full-D contraction yields per-head scores --
        # no per-head lane slices and no K=8 matmuls.
        q_blk = (q[None, :, :] * head_mask).reshape(H * Sq, D)
        s = jnp.einsum('qd,kd->qk', q_blk, k,
                       preferred_element_type=jnp.float32) * scale     # (H*Sq, Sk)
        s = s - jnp.max(s, axis=-1, keepdims=True)
        p = jnp.exp(s)
        p = p / jnp.sum(p, axis=-1, keepdims=True)    # exact divide (f32 parity)
        o_all = jnp.dot(p, v, preferred_element_type=jnp.float32)      # (H*Sq, D)
        # keep head-h lanes of row-block h, collapse head blocks -> concat-head o
        o = jnp.sum(o_all.reshape(H, Sq, D) * head_mask, axis=0)       # (Sq, D)

        wo = w_out_ref[idx]                           # (D, D)
        bo = vec[6 + idx:7 + idx, :]                  # (1, D)
        return jnp.dot(o, wo, preferred_element_type=jnp.float32) + bo

    # --- sub-layer 1: tcr self-attention (pre-norm, residual fused) ----------
    t_norm = layernorm(tcr, 0)
    tcr = tcr + mha(t_norm, t_norm, 0)
    # --- sub-layer 2: epitope self-attention ----------------------------------
    e_norm = layernorm(epi, 1)
    epi = epi + mha(e_norm, e_norm, 1)
    # --- sub-layer 3: tcr -> epitope cross-attention (kv = updated epitope) ---
    t_norm = layernorm(tcr, 2)
    tcr = tcr + mha(t_norm, epi, 2)

    # --- shared FFN: one pass over the concatenated tcr+epitope rows ----------
    xs = jnp.concatenate([tcr, epi], axis=0)                            # (St+Se, D)
    h1 = jnp.dot(xs, w_f1_ref[...], preferred_element_type=jnp.float32) + b_f1_ref[...]
    h1 = jnp.maximum(h1, 0.0)
    y = jnp.dot(h1, w_f2_ref[...], preferred_element_type=jnp.float32) + vec[9:10, :]
    tcr = tcr + y[:St]
    epi = epi + y[St:]

    # TODO(synk): key_padding_mask support and training-mode dropout
    # (pltpu.prng_seed / prng_random_bits) are not implemented; this matches
    # eval-mode forward with masks left at their default None.
    tcr_o_ref[...] = tcr.astype(tcr_o_ref.dtype)
    epi_o_ref[...] = epi.astype(epi_o_ref.dtype)


# ----------------------------- wrapper ---------------------------------------

def cross_attention_block(packed, tcr, epitope, num_heads):
    """Whole CrossAttentionBlock in one pallas_call, parallel grid over batch."""
    B, St, D = tcr.shape
    Se = epitope.shape[1]

    w_in, w_out = packed["w_in"], packed["w_out"]
    w_f1, w_f2 = packed["w_f1"], packed["w_f2"]
    b_in, b_f1, vec_d = packed["b_in"], packed["b_f1"], packed["vec_d"]

    def resident(arr):      # full-array block, same block index for every step
        return pl.BlockSpec(arr.shape, lambda b, _n=arr.ndim: (0,) * _n)

    # Advisory cost estimate so XLA can overlap the call with neighbouring ops.
    def mha_flops(Sq, Sk, cross):
        f = 2 * Sq * D * 3 * D + (2 * Sk * D * 3 * D if cross else 0)
        f += 2 * (num_heads * Sq) * D * Sk + 2 * (num_heads * Sq) * Sk * D
        f += 2 * Sq * D * D
        return f
    flops = B * (mha_flops(St, St, False) + mha_flops(Se, Se, False)
                 + mha_flops(St, Se, True) + 2 * 2 * (St + Se) * D * 4 * D)
    transcendentals = B * num_heads * (St * St + Se * Se + St * Se)
    param_bytes = 4 * sum(int(a.size) for a in
                          (w_in, w_out, w_f1, w_f2, b_in, b_f1, vec_d))
    bytes_accessed = param_bytes + 4 * 2 * B * (St + Se) * D

    kern = functools.partial(_block_kernel, num_heads=num_heads)
    return pl.pallas_call(
        kern,
        grid=(B,),
        out_shape=(jax.ShapeDtypeStruct((B, St, D), tcr.dtype),
                   jax.ShapeDtypeStruct((B, Se, D), epitope.dtype)),
        in_specs=[
            pl.BlockSpec((None, St, D), lambda b: (b, 0, 0)),
            pl.BlockSpec((None, Se, D), lambda b: (b, 0, 0)),
            resident(w_in), resident(w_out), resident(w_f1), resident(w_f2),
            resident(b_in), resident(b_f1), resident(vec_d),
        ],
        out_specs=(pl.BlockSpec((None, St, D), lambda b: (b, 0, 0)),
                   pl.BlockSpec((None, Se, D), lambda b: (b, 0, 0))),
        compiler_params=pltpu.CompilerParams(dimension_semantics=("parallel",)),
        cost_estimate=pl.CostEstimate(flops=int(flops),
                                      transcendentals=int(transcendentals),
                                      bytes_accessed=int(bytes_accessed)),
    )(tcr, epitope, w_in, w_out, w_f1, w_f2, b_in, b_f1, vec_d)


# ----------------------------- parameters ------------------------------------

def init_params(key, embed_dim):
    D = embed_dim
    keys = jax.random.split(key, 13)
    n = lambda kk, shp: 0.02 * jax.random.normal(kk, shp, jnp.float32)

    def mha_params(k):
        kk = jax.random.split(k, 8)
        # weights stored pre-transposed in (in, out) layout -> x @ W in-kernel
        return {"wq": n(kk[0], (D, D)), "wk": n(kk[1], (D, D)),
                "wv": n(kk[2], (D, D)), "wo": n(kk[3], (D, D)),
                "bq": n(kk[4], (D,)), "bk": n(kk[5], (D,)),
                "bv": n(kk[6], (D,)), "bo": n(kk[7], (D,))}

    return {
        "tcr_self": mha_params(keys[0]),
        "epi_self": mha_params(keys[1]),
        "cross":    mha_params(keys[2]),
        "ln1_g": 1.0 + n(keys[3], (D,)), "ln1_b": n(keys[4], (D,)),
        "ln2_g": 1.0 + n(keys[5], (D,)), "ln2_b": n(keys[6], (D,)),
        "ln3_g": 1.0 + n(keys[7], (D,)), "ln3_b": n(keys[8], (D,)),
        "ffn": {"w1": n(keys[9], (D, 4 * D)), "b1": n(keys[10], (4 * D,)),
                "w2": n(keys[11], (4 * D, D)), "b2": n(keys[12], (D,))},
    }


def pack_params(p):
    """Pack logical params into the few VMEM slabs the kernel consumes."""
    def qkv_w(a):
        return jnp.concatenate([a["wq"], a["wk"], a["wv"]], axis=1)   # (D, 3D)

    def qkv_b(a):
        return jnp.concatenate([a["bq"], a["bk"], a["bv"]], axis=0)   # (3D,)

    attns = (p["tcr_self"], p["epi_self"], p["cross"])
    return {
        "w_in":  jnp.stack([qkv_w(a) for a in attns]),                # (3, D, 3D)
        "w_out": jnp.stack([a["wo"] for a in attns]),                 # (3, D, D)
        "w_f1":  p["ffn"]["w1"],                                      # (D, 4D)
        "w_f2":  p["ffn"]["w2"],                                      # (4D, D)
        "b_in":  jnp.stack([qkv_b(a) for a in attns]),                # (3, 3D)
        "b_f1":  p["ffn"]["b1"][None, :],                             # (1, 4D)
        "vec_d": jnp.stack([p["ln1_g"], p["ln2_g"], p["ln3_g"],
                            p["ln1_b"], p["ln2_b"], p["ln3_b"],
                            p["tcr_self"]["bo"], p["epi_self"]["bo"],
                            p["cross"]["bo"], p["ffn"]["b2"]]),       # (10, D)
    }


# ----------------------------- reference (pure JAX) ---------------------------

def _ref_ln(x, g, b):
    m = x.mean(-1, keepdims=True)
    v = ((x - m) ** 2).mean(-1, keepdims=True)
    return (x - m) / jnp.sqrt(v + 1e-5) * g + b


def _ref_mha(xq, xkv, p, H):
    B, Sq, D = xq.shape
    Sk = xkv.shape[1]
    hd = D // H
    q = xq @ p["wq"] + p["bq"]
    k = xkv @ p["wk"] + p["bk"]
    v = xkv @ p["wv"] + p["bv"]
    q = q.reshape(B, Sq, H, hd).transpose(0, 2, 1, 3)
    k = k.reshape(B, Sk, H, hd).transpose(0, 2, 1, 3)
    v = v.reshape(B, Sk, H, hd).transpose(0, 2, 1, 3)
    s = jnp.einsum("bhqd,bhkd->bhqk", q, k) / math.sqrt(hd)
    a = jax.nn.softmax(s, axis=-1)
    o = jnp.einsum("bhqk,bhkd->bhqd", a, v).transpose(0, 2, 1, 3).reshape(B, Sq, D)
    return o @ p["wo"] + p["bo"]


def _ref_ffn(x, p):
    h = jnp.maximum(x @ p["w1"] + p["b1"], 0.0)
    return h @ p["w2"] + p["b2"]


def ref_block(params, tcr, epitope, H):
    t_norm = _ref_ln(tcr, params["ln1_g"], params["ln1_b"])
    tcr = tcr + _ref_mha(t_norm, t_norm, params["tcr_self"], H)
    e_norm = _ref_ln(epitope, params["ln2_g"], params["ln2_b"])
    epitope = epitope + _ref_mha(e_norm, e_norm, params["epi_self"], H)
    t_norm = _ref_ln(tcr, params["ln3_g"], params["ln3_b"])
    tcr = tcr + _ref_mha(t_norm, epitope, params["cross"], H)
    tcr = tcr + _ref_ffn(tcr, params["ffn"])
    epitope = epitope + _ref_ffn(epitope, params["ffn"])
    return tcr, epitope


# ----------------------------- main -------------------------------------------

if __name__ == "__main__":
    B, S_TCR, S_EPI, D, H = 2, 8, 16, 32, 4

    key = jax.random.PRNGKey(0)
    k_p, k_t, k_e = jax.random.split(key, 3)
    params = init_params(k_p, D)
    packed = pack_params(params)     # pre-pack once, outside the hot path
    tcr = jax.random.normal(k_t, (B, S_TCR, D), jnp.float32)
    epitope = jax.random.normal(k_e, (B, S_EPI, D), jnp.float32)

    fn = jax.jit(functools.partial(cross_attention_block, num_heads=H))
    out_tcr, out_epi = fn(packed, tcr, epitope)
    jax.block_until_ready((out_tcr, out_epi))

    ref_tcr, ref_epi = ref_block(params, tcr, epitope, H)
    err_t = float(jnp.max(jnp.abs(out_tcr - ref_tcr)))
    err_e = float(jnp.max(jnp.abs(out_epi - ref_epi)))
    assert jnp.allclose(out_tcr, ref_tcr, atol=1e-3, rtol=1e-3), err_t
    assert jnp.allclose(out_epi, ref_epi, atol=1e-3, rtol=1e-3), err_e

    print("KERNEL_OK")
</pallas_src>

<mosaic_0001>
module attributes {stable_mosaic.version = 11 : i64} {
  func.func @_block_kernel(%arg0: i32, %arg1: memref<1x8x32xf32, #tpu.memory_space<vmem>>, %arg2: memref<1x16x32xf32, #tpu.memory_space<vmem>>, %arg3: memref<3x32x96xf32, #tpu.memory_space<vmem>>, %arg4: memref<3x32x32xf32, #tpu.memory_space<vmem>>, %arg5: memref<32x128xf32, #tpu.memory_space<vmem>>, %arg6: memref<128x32xf32, #tpu.memory_space<vmem>>, %arg7: memref<3x96xf32, #tpu.memory_space<vmem>>, %arg8: memref<1x128xf32, #tpu.memory_space<vmem>>, %arg9: memref<10x32xf32, #tpu.memory_space<vmem>>, %arg10: memref<1x8x32xf32, #tpu.memory_space<vmem>>, %arg11: memref<1x16x32xf32, #tpu.memory_space<vmem>>) attributes {dimension_semantics = [#tpu.dimension_semantics<parallel>], iteration_bounds = array<i64: 2>, scalar_prefetch = 0 : i64, scratch_operands = 0 : i64, tpu.core_type = #tpu.core_type<tc>, window_params = [{transform_indices = @transform_0, window_bounds = array<i64: 1, 8, 32>}, {transform_indices = @transform_1, window_bounds = array<i64: 1, 16, 32>}, {pipeline_mode = #tpu.pipeline_mode<synchronous>, transform_indices = @transform_2, window_bounds = array<i64: 3, 32, 96>}, {pipeline_mode = #tpu.pipeline_mode<synchronous>, transform_indices = @transform_3, window_bounds = array<i64: 3, 32, 32>}, {pipeline_mode = #tpu.pipeline_mode<synchronous>, transform_indices = @transform_4, window_bounds = array<i64: 32, 128>}, {pipeline_mode = #tpu.pipeline_mode<synchronous>, transform_indices = @transform_5, window_bounds = array<i64: 128, 32>}, {pipeline_mode = #tpu.pipeline_mode<synchronous>, transform_indices = @transform_6, window_bounds = array<i64: 3, 96>}, {pipeline_mode = #tpu.pipeline_mode<synchronous>, transform_indices = @transform_7, window_bounds = array<i64: 1, 128>}, {pipeline_mode = #tpu.pipeline_mode<synchronous>, transform_indices = @transform_8, window_bounds = array<i64: 10, 32>}, {transform_indices = @transform_9, window_bounds = array<i64: 1, 8, 32>}, {transform_indices = @transform_10, window_bounds = array<i64: 1, 16, 32>}]} {
    %c0 = arith.constant 0 : index
    %c0_0 = arith.constant 0 : index
    %c0_1 = arith.constant 0 : index
    %0 = vector.load %arg1[%c0, %c0_0, %c0_1] : memref<1x8x32xf32, #tpu.memory_space<vmem>>, vector<1x8x32xf32>
    %1 = vector.shape_cast %0 : vector<1x8x32xf32> to vector<8x32xf32>
    %c0_2 = arith.constant 0 : index
    %c0_3 = arith.constant 0 : index
    %c0_4 = arith.constant 0 : index
    %2 = vector.load %arg2[%c0_2, %c0_3, %c0_4] : memref<1x16x32xf32, #tpu.memory_space<vmem>>, vector<1x16x32xf32>
    %3 = vector.shape_cast %2 : vector<1x16x32xf32> to vector<16x32xf32>
    %c0_5 = arith.constant 0 : index
    %c0_6 = arith.constant 0 : index
    %4 = vector.load %arg7[%c0_5, %c0_6] : memref<3x96xf32, #tpu.memory_space<vmem>>, vector<3x96xf32>
    %c0_7 = arith.constant 0 : index
    %c0_8 = arith.constant 0 : index
    %5 = vector.load %arg9[%c0_7, %c0_8] : memref<10x32xf32, #tpu.memory_space<vmem>>, vector<10x32xf32>
    %6 = tpu.iota {dimensions = array<i32: 2>} : vector<4x1x32xi32>
    %7 = tpu.iota {dimensions = array<i32: 0>} : vector<4x1x32xi32>
    %c8_i32 = arith.constant 8 : i32
    %8 = vector.broadcast %c8_i32 : i32 to vector<4x1x32xi32>
    %9 = arith.muli %7, %8 : vector<4x1x32xi32>
    %10 = arith.cmpi sge, %6, %9 : vector<4x1x32xi32>
    %c1_i32 = arith.constant 1 : i32
    %11 = vector.broadcast %c1_i32 : i32 to vector<4x1x32xi32>
    %12 = arith.addi %7, %11 : vector<4x1x32xi32>
    %c8_i32_9 = arith.constant 8 : i32
    %13 = vector.broadcast %c8_i32_9 : i32 to vector<4x1x32xi32>
    %14 = arith.muli %12, %13 : vector<4x1x32xi32>
    %15 = arith.cmpi slt, %6, %14 : vector<4x1x32xi32>
    %16 = arith.andi %10, %15 : vector<4x1x32xi1>
    %17 = arith.extui %16 : vector<4x1x32xi1> to vector<4x1x32xi32>
    %18 = arith.sitofp %17 : vector<4x1x32xi32> to vector<4x1x32xf32>
    %19 = vector.extract_strided_slice %5 {offsets = [0, 0], sizes = [1, 32], strides = [1, 1]} : vector<10x32xf32> to vector<1x32xf32>
    %20 = vector.extract_strided_slice %5 {offsets = [3, 0], sizes = [1, 32], strides = [1, 1]} : vector<10x32xf32> to vector<1x32xf32>
    %cst = arith.constant dense<0.000000e+00> : vector<8xf32>
    %21 = vector.multi_reduction <add>, %1, %cst [1] : vector<8x32xf32> to vector<8xf32>
    %22 = vector.shape_cast %21 : vector<8xf32> to vector<8x1xf32>
    %cst_10 = arith.constant 3.200000e+01 : f32
    %23 = vector.broadcast %cst_10 : f32 to vector<8x1xf32>
    %24 = arith.divf %22, %23 : vector<8x1xf32>
    %25 = arith.mulf %1, %1 : vector<8x32xf32>
    %cst_11 = arith.constant dense<0.000000e+00> : vector<8xf32>
    %26 = vector.multi_reduction <add>, %25, %cst_11 [1] : vector<8x32xf32> to vector<8xf32>
    %27 = vector.shape_cast %26 : vector<8xf32> to vector<8x1xf32>
    %cst_12 = arith.constant 3.200000e+01 : f32
    %28 = vector.broadcast %cst_12 : f32 to vector<8x1xf32>
    %29 = arith.divf %27, %28 : vector<8x1xf32>
    %30 = arith.mulf %24, %24 : vector<8x1xf32>
    %31 = arith.subf %29, %30 : vector<8x1xf32>
    %32 = vector.broadcast %24 : vector<8x1xf32> to vector<8x32xf32>
    %33 = arith.subf %1, %32 : vector<8x32xf32>
    %cst_13 = arith.constant 9.99999974E-6 : f32
    %34 = vector.broadcast %cst_13 : f32 to vector<8x1xf32>
    %35 = arith.addf %31, %34 : vector<8x1xf32>
    %36 = math.rsqrt %35 : vector<8x1xf32>
    %37 = vector.broadcast %36 : vector<8x1xf32> to vector<8x32xf32>
    %38 = arith.mulf %33, %37 : vector<8x32xf32>
    %39 = vector.broadcast %19 : vector<1x32xf32> to vector<8x32xf32>
    %40 = arith.mulf %38, %39 : vector<8x32xf32>
    %41 = vector.broadcast %20 : vector<1x32xf32> to vector<8x32xf32>
    %42 = arith.addf %40, %41 : vector<8x32xf32>
    %c0_14 = arith.constant 0 : index
    %c0_15 = arith.constant 0 : index
    %c0_16 = arith.constant 0 : index
    %43 = vector.load %arg3[%c0_14, %c0_15, %c0_16] : memref<3x32x96xf32, #tpu.memory_space<vmem>>, vector<1x32x96xf32>
    %44 = vector.shape_cast %43 : vector<1x32x96xf32> to vector<32x96xf32>
    %45 = vector.extract_strided_slice %4 {offsets = [0, 0], sizes = [1, 96], strides = [1, 1]} : vector<3x96xf32> to vector<1x96xf32>
    %cst_17 = arith.constant dense<0.000000e+00> : vector<8x96xf32>
    %46 = tpu.matmul %42, %44, %cst_17 {dimension_numbers = #tpu.dot_dimension_numbers<[1], [0], [0], [1], [0, 0, 1, 1], [], []>} : vector<8x32xf32>, vector<32x96xf32>, vector<8x96xf32> -> vector<8x96xf32>
    %47 = vector.broadcast %45 : vector<1x96xf32> to vector<8x96xf32>
    %48 = arith.addf %46, %47 : vector<8x96xf32>
    %49 = vector.extract_strided_slice %48 {offsets = [0, 0], sizes = [8, 32], strides = [1, 1]} : vector<8x96xf32> to vector<8x32xf32>
    %50 = vector.extract_strided_slice %48 {offsets = [0, 32], sizes = [8, 32], strides = [1, 1]} : vector<8x96xf32> to vector<8x32xf32>
    %51 = vector.extract_strided_slice %48 {offsets = [0, 64], sizes = [8, 32], strides = [1, 1]} : vector<8x96xf32> to vector<8x32xf32>
    %52 = vector.shape_cast %49 : vector<8x32xf32> to vector<1x8x32xf32>
    %53 = vector.broadcast %52 : vector<1x8x32xf32> to vector<4x8x32xf32>
    %54 = vector.broadcast %18 : vector<4x1x32xf32> to vector<4x8x32xf32>
    %55 = arith.mulf %53, %54 : vector<4x8x32xf32>
    %56 = vector.shape_cast %55 : vector<4x8x32xf32> to vector<32x32xf32>
    "tpu.trace_start"() <{level = 10 : i32, message = "qd,kd->qk"}> : () -> ()
    %cst_18 = arith.constant dense<0.000000e+00> : vector<32x8xf32>
    %57 = tpu.matmul %56, %50, %cst_18 {dimension_numbers = #tpu.dot_dimension_numbers<[1], [1], [0], [0], [0, 0, 1, 0], [], []>} : vector<32x32xf32>, vector<8x32xf32>, vector<32x8xf32> -> vector<32x8xf32>
    "tpu.trace_stop"() : () -> ()
    %cst_19 = arith.constant 0.353553385 : f32
    %58 = vector.broadcast %cst_19 : f32 to vector<32x8xf32>
    %59 = arith.mulf %57, %58 : vector<32x8xf32>
    %cst_20 = arith.constant dense<0xFF800000> : vector<32xf32>
    %60 = vector.multi_reduction <maximumf>, %59, %cst_20 [1] : vector<32x8xf32> to vector<32xf32>
    %61 = vector.shape_cast %60 : vector<32xf32> to vector<32x1xf32>
    %62 = vector.broadcast %61 : vector<32x1xf32> to vector<32x8xf32>
    %63 = arith.subf %59, %62 : vector<32x8xf32>
    %64 = math.exp %63 : vector<32x8xf32>
    %cst_21 = arith.constant dense<0.000000e+00> : vector<32xf32>
    %65 = vector.multi_reduction <add>, %64, %cst_21 [1] : vector<32x8xf32> to vector<32xf32>
    %66 = vector.shape_cast %65 : vector<32xf32> to vector<32x1xf32>
    %67 = vector.broadcast %66 : vector<32x1xf32> to vector<32x8xf32>
    %68 = arith.divf %64, %67 : vector<32x8xf32>
    %cst_22 = arith.constant dense<0.000000e+00> : vector<32x32xf32>
    %69 = tpu.matmul %68, %51, %cst_22 {dimension_numbers = #tpu.dot_dimension_numbers<[1], [0], [0], [1], [0, 0, 1, 1], [], []>} : vector<32x8xf32>, vector<8x32xf32>, vector<32x32xf32> -> vector<32x32xf32>
    %70 = vector.shape_cast %69 : vector<32x32xf32> to vector<4x8x32xf32>
    %71 = vector.broadcast %18 : vector<4x1x32xf32> to vector<4x8x32xf32>
    %72 = arith.mulf %70, %71 : vector<4x8x32xf32>
    %cst_23 = arith.constant dense<0.000000e+00> : vector<8x32xf32>
    %73 = vector.multi_reduction <add>, %72, %cst_23 [0] : vector<4x8x32xf32> to vector<8x32xf32>
    %c0_24 = arith.constant 0 : index
    %c0_25 = arith.constant 0 : index
    %c0_26 = arith.constant 0 : index
    %74 = vector.load %arg4[%c0_24, %c0_25, %c0_26] : memref<3x32x32xf32, #tpu.memory_space<vmem>>, vector<1x32x32xf32>
    %75 = vector.shape_cast %74 : vector<1x32x32xf32> to vector<32x32xf32>
    %76 = vector.extract_strided_slice %5 {offsets = [6, 0], sizes = [1, 32], strides = [1, 1]} : vector<10x32xf32> to vector<1x32xf32>
    %cst_27 = arith.constant dense<0.000000e+00> : vector<8x32xf32>
    %77 = tpu.matmul %73, %75, %cst_27 {dimension_numbers = #tpu.dot_dimension_numbers<[1], [0], [0], [1], [0, 0, 1, 1], [], []>} : vector<8x32xf32>, vector<32x32xf32>, vector<8x32xf32> -> vector<8x32xf32>
    %78 = vector.broadcast %76 : vector<1x32xf32> to vector<8x32xf32>
    %79 = arith.addf %77, %78 : vector<8x32xf32>
    %80 = arith.addf %1, %79 : vector<8x32xf32>
    %81 = vector.extract_strided_slice %5 {offsets = [1, 0], sizes = [1, 32], strides = [1, 1]} : vector<10x32xf32> to vector<1x32xf32>
    %82 = vector.extract_strided_slice %5 {offsets = [4, 0], sizes = [1, 32], strides = [1, 1]} : vector<10x32xf32> to vector<1x32xf32>
    %cst_28 = arith.constant dense<0.000000e+00> : vector<16xf32>
    %83 = vector.multi_reduction <add>, %3, %cst_28 [1] : vector<16x32xf32> to vector<16xf32>
    %84 = vector.shape_cast %83 : vector<16xf32> to vector<16x1xf32>
    %cst_29 = arith.constant 3.200000e+01 : f32
    %85 = vector.broadcast %cst_29 : f32 to vector<16x1xf32>
    %86 = arith.divf %84, %85 : vector<16x1xf32>
    %87 = arith.mulf %3, %3 : vector<16x32xf32>
    %cst_30 = arith.constant dense<0.000000e+00> : vector<16xf32>
    %88 = vector.multi_reduction <add>, %87, %cst_30 [1] : vector<16x32xf32> to vector<16xf32>
    %89 = vector.shape_cast %88 : vector<16xf32> to vector<16x1xf32>
    %cst_31 = arith.constant 3.200000e+01 : f32
    %90 = vector.broadcast %cst_31 : f32 to vector<16x1xf32>
    %91 = arith.divf %89, %90 : vector<16x1xf32>
    %92 = arith.mulf %86, %86 : vector<16x1xf32>
    %93 = arith.subf %91, %92 : vector<16x1xf32>
    %94 = vector.broadcast %86 : vector<16x1xf32> to vector<16x32xf32>
    %95 = arith.subf %3, %94 : vector<16x32xf32>
    %cst_32 = arith.constant 9.99999974E-6 : f32
    %96 = vector.broadcast %cst_32 : f32 to vector<16x1xf32>
    %97 = arith.addf %93, %96 : vector<16x1xf32>
    %98 = math.rsqrt %97 : vector<16x1xf32>
    %99 = vector.broadcast %98 : vector<16x1xf32> to vector<16x32xf32>
    %100 = arith.mulf %95, %99 : vector<16x32xf32>
    %101 = vector.broadcast %81 : vector<1x32xf32> to vector<16x32xf32>
    %102 = arith.mulf %100, %101 : vector<16x32xf32>
    %103 = vector.broadcast %82 : vector<1x32xf32> to vector<16x32xf32>
    %104 = arith.addf %102, %103 : vector<16x32xf32>
    %c1 = arith.constant 1 : index
    %c0_33 = arith.constant 0 : index
    %c0_34 = arith.constant 0 : index
    %105 = vector.load %arg3[%c1, %c0_33, %c0_34] : memref<3x32x96xf32, #tpu.memory_space<vmem>>, vector<1x32x96xf32>
    %106 = vector.shape_cast %105 : vector<1x32x96xf32> to vector<32x96xf32>
    %107 = vector.extract_strided_slice %4 {offsets = [1, 0], sizes = [1, 96], strides = [1, 1]} : vector<3x96xf32> to vector<1x96xf32>
    %cst_35 = arith.constant dense<0.000000e+00> : vector<16x96xf32>
    %108 = tpu.matmul %104, %106, %cst_35 {dimension_numbers = #tpu.dot_dimension_numbers<[1], [0], [0], [1], [0, 0, 1, 1], [], []>} : vector<16x32xf32>, vector<32x96xf32>, vector<16x96xf32> -> vector<16x96xf32>
    %109 = vector.broadcast %107 : vector<1x96xf32> to vector<16x96xf32>
    %110 = arith.addf %108, %109 : vector<16x96xf32>
    %111 = vector.extract_strided_slice %110 {offsets = [0, 0], sizes = [16, 32], strides = [1, 1]} : vector<16x96xf32> to vector<16x32xf32>
    %112 = vector.extract_strided_slice %110 {offsets = [0, 32], sizes = [16, 32], strides = [1, 1]} : vector<16x96xf32> to vector<16x32xf32>
    %113 = vector.extract_strided_slice %110 {offsets = [0, 64], sizes = [16, 32], strides = [1, 1]} : vector<16x96xf32> to vector<16x32xf32>
    %114 = vector.shape_cast %111 : vector<16x32xf32> to vector<1x16x32xf32>
    %115 = vector.broadcast %114 : vector<1x16x32xf32> to vector<4x16x32xf32>
    %116 = vector.broadcast %18 : vector<4x1x32xf32> to vector<4x16x32xf32>
    %117 = arith.mulf %115, %116 : vector<4x16x32xf32>
    %118 = vector.shape_cast %117 : vector<4x16x32xf32> to vector<64x32xf32>
    "tpu.trace_start"() <{level = 10 : i32, message = "qd,kd->qk"}> : () -> ()
    %cst_36 = arith.constant dense<0.000000e+00> : vector<64x16xf32>
    %119 = tpu.matmul %118, %112, %cst_36 {dimension_numbers = #tpu.dot_dimension_numbers<[1], [1], [0], [0], [0, 0, 1, 0], [], []>} : vector<64x32xf32>, vector<16x32xf32>, vector<64x16xf32> -> vector<64x16xf32>
    "tpu.trace_stop"() : () -> ()
    %cst_37 = arith.constant 0.353553385 : f32
    %120 = vector.broadcast %cst_37 : f32 to vector<64x16xf32>
    %121 = arith.mulf %119, %120 : vector<64x16xf32>
    %cst_38 = arith.constant dense<0xFF800000> : vector<64xf32>
    %122 = vector.multi_reduction <maximumf>, %121, %cst_38 [1] : vector<64x16xf32> to vector<64xf32>
    %123 = vector.shape_cast %122 : vector<64xf32> to vector<64x1xf32>
    %124 = vector.broadcast %123 : vector<64x1xf32> to vector<64x16xf32>
    %125 = arith.subf %121, %124 : vector<64x16xf32>
    %126 = math.exp %125 : vector<64x16xf32>
    %cst_39 = arith.constant dense<0.000000e+00> : vector<64xf32>
    %127 = vector.multi_reduction <add>, %126, %cst_39 [1] : vector<64x16xf32> to vector<64xf32>
    %128 = vector.shape_cast %127 : vector<64xf32> to vector<64x1xf32>
    %129 = vector.broadcast %128 : vector<64x1xf32> to vector<64x16xf32>
    %130 = arith.divf %126, %129 : vector<64x16xf32>
    %cst_40 = arith.constant dense<0.000000e+00> : vector<64x32xf32>
    %131 = tpu.matmul %130, %113, %cst_40 {dimension_numbers = #tpu.dot_dimension_numbers<[1], [0], [0], [1], [0, 0, 1, 1], [], []>} : vector<64x16xf32>, vector<16x32xf32>, vector<64x32xf32> -> vector<64x32xf32>
    %132 = vector.shape_cast %131 : vector<64x32xf32> to vector<4x16x32xf32>
    %133 = vector.broadcast %18 : vector<4x1x32xf32> to vector<4x16x32xf32>
    %134 = arith.mulf %132, %133 : vector<4x16x32xf32>
    %cst_41 = arith.constant dense<0.000000e+00> : vector<16x32xf32>
    %135 = vector.multi_reduction <add>, %134, %cst_41 [0] : vector<4x16x32xf32> to vector<16x32xf32>
    %c1_42 = arith.constant 1 : index
    %c0_43 = arith.constant 0 : index
    %c0_44 = arith.constant 0 : index
    %136 = vector.load %arg4[%c1_42, %c0_43, %c0_44] : memref<3x32x32xf32, #tpu.memory_space<vmem>>, vector<1x32x32xf32>
    %137 = vector.shape_cast %136 : vector<1x32x32xf32> to vector<32x32xf32>
    %138 = vector.extract_strided_slice %5 {offsets = [7, 0], sizes = [1, 32], strides = [1, 1]} : vector<10x32xf32> to vector<1x32xf32>
    %cst_45 = arith.constant dense<0.000000e+00> : vector<16x32xf32>
    %139 = tpu.matmul %135, %137, %cst_45 {dimension_numbers = #tpu.dot_dimension_numbers<[1], [0], [0], [1], [0, 0, 1, 1], [], []>} : vector<16x32xf32>, vector<32x32xf32>, vector<16x32xf32> -> vector<16x32xf32>
    %140 = vector.broadcast %138 : vector<1x32xf32> to vector<16x32xf32>
    %141 = arith.addf %139, %140 : vector<16x32xf32>
    %142 = arith.addf %3, %141 : vector<16x32xf32>
    %143 = vector.extract_strided_slice %5 {offsets = [2, 0], sizes = [1, 32], strides = [1, 1]} : vector<10x32xf32> to vector<1x32xf32>
    %144 = vector.extract_strided_slice %5 {offsets = [5, 0], sizes = [1, 32], strides = [1, 1]} : vector<10x32xf32> to vector<1x32xf32>
    %cst_46 = arith.constant dense<0.000000e+00> : vector<8xf32>
    %145 = vector.multi_reduction <add>, %80, %cst_46 [1] : vector<8x32xf32> to vector<8xf32>
    %146 = vector.shape_cast %145 : vector<8xf32> to vector<8x1xf32>
    %cst_47 = arith.constant 3.200000e+01 : f32
    %147 = vector.broadcast %cst_47 : f32 to vector<8x1xf32>
    %148 = arith.divf %146, %147 : vector<8x1xf32>
    %149 = arith.mulf %80, %80 : vector<8x32xf32>
    %cst_48 = arith.constant dense<0.000000e+00> : vector<8xf32>
    %150 = vector.multi_reduction <add>, %149, %cst_48 [1] : vector<8x32xf32> to vector<8xf32>
    %151 = vector.shape_cast %150 : vector<8xf32> to vector<8x1xf32>
    %cst_49 = arith.constant 3.200000e+01 : f32
    %152 = vector.broadcast %cst_49 : f32 to vector<8x1xf32>
    %153 = arith.divf %151, %152 : vector<8x1xf32>
    %154 = arith.mulf %148, %148 : vector<8x1xf32>
    %155 = arith.subf %153, %154 : vector<8x1xf32>
    %156 = vector.broadcast %148 : vector<8x1xf32> to vector<8x32xf32>
    %157 = arith.subf %80, %156 : vector<8x32xf32>
    %cst_50 = arith.constant 9.99999974E-6 : f32
    %158 = vector.broadcast %cst_50 : f32 to vector<8x1xf32>
    %159 = arith.addf %155, %158 : vector<8x1xf32>
    %160 = math.rsqrt %159 : vector<8x1xf32>
    %161 = vector.broadcast %160 : vector<8x1xf32> to vector<8x32xf32>
    %162 = arith.mulf %157, %161 : vector<8x32xf32>
    %163 = vector.broadcast %143 : vector<1x32xf32> to vector<8x32xf32>
    %164 = arith.mulf %162, %163 : vector<8x32xf32>
    %165 = vector.broadcast %144 : vector<1x32xf32> to vector<8x32xf32>
    %166 = arith.addf %164, %165 : vector<8x32xf32>
    %c2 = arith.constant 2 : index
    %c0_51 = arith.constant 0 : index
    %c0_52 = arith.constant 0 : index
    %167 = vector.load %arg3[%c2, %c0_51, %c0_52] : memref<3x32x96xf32, #tpu.memory_space<vmem>>, vector<1x32x96xf32>
    %168 = vector.shape_cast %167 : vector<1x32x96xf32> to vector<32x96xf32>
    %169 = vector.extract_strided_slice %4 {offsets = [2, 0], sizes = [1, 96], strides = [1, 1]} : vector<3x96xf32> to vector<1x96xf32>
    %cst_53 = arith.constant dense<0.000000e+00> : vector<8x96xf32>
    %170 = tpu.matmul %166, %168, %cst_53 {dimension_numbers = #tpu.dot_dimension_numbers<[1], [0], [0], [1], [0, 0, 1, 1], [], []>} : vector<8x32xf32>, vector<32x96xf32>, vector<8x96xf32> -> vector<8x96xf32>
    %171 = vector.broadcast %169 : vector<1x96xf32> to vector<8x96xf32>
    %172 = arith.addf %170, %171 : vector<8x96xf32>
    %cst_54 = arith.constant dense<0.000000e+00> : vector<16x96xf32>
    %173 = tpu.matmul %142, %168, %cst_54 {dimension_numbers = #tpu.dot_dimension_numbers<[1], [0], [0], [1], [0, 0, 1, 1], [], []>} : vector<16x32xf32>, vector<32x96xf32>, vector<16x96xf32> -> vector<16x96xf32>
    %174 = vector.broadcast %169 : vector<1x96xf32> to vector<16x96xf32>
    %175 = arith.addf %173, %174 : vector<16x96xf32>
    %176 = vector.extract_strided_slice %172 {offsets = [0, 0], sizes = [8, 32], strides = [1, 1]} : vector<8x96xf32> to vector<8x32xf32>
    %177 = vector.extract_strided_slice %175 {offsets = [0, 32], sizes = [16, 32], strides = [1, 1]} : vector<16x96xf32> to vector<16x32xf32>
    %178 = vector.extract_strided_slice %175 {offsets = [0, 64], sizes = [16, 32], strides = [1, 1]} : vector<16x96xf32> to vector<16x32xf32>
    %179 = vector.shape_cast %176 : vector<8x32xf32> to vector<1x8x32xf32>
    %180 = vector.broadcast %179 : vector<1x8x32xf32> to vector<4x8x32xf32>
    %181 = vector.broadcast %18 : vector<4x1x32xf32> to vector<4x8x32xf32>
    %182 = arith.mulf %180, %181 : vector<4x8x32xf32>
    %183 = vector.shape_cast %182 : vector<4x8x32xf32> to vector<32x32xf32>
    "tpu.trace_start"() <{level = 10 : i32, message = "qd,kd->qk"}> : () -> ()
    %cst_55 = arith.constant dense<0.000000e+00> : vector<32x16xf32>
    %184 = tpu.matmul %183, %177, %cst_55 {dimension_numbers = #tpu.dot_dimension_numbers<[1], [1], [0], [0], [0, 0, 1, 0], [], []>} : vector<32x32xf32>, vector<16x32xf32>, vector<32x16xf32> -> vector<32x16xf32>
    "tpu.trace_stop"() : () -> ()
    %cst_56 = arith.constant 0.353553385 : f32
    %185 = vector.broadcast %cst_56 : f32 to vector<32x16xf32>
    %186 = arith.mulf %184, %185 : vector<32x16xf32>
    %cst_57 = arith.constant dense<0xFF800000> : vector<32xf32>
    %187 = vector.multi_reduction <maximumf>, %186, %cst_57 [1] : vector<32x16xf32> to vector<32xf32>
    %188 = vector.shape_cast %187 : vector<32xf32> to vector<32x1xf32>
    %189 = vector.broadcast %188 : vector<32x1xf32> to vector<32x16xf32>
    %190 = arith.subf %186, %189 : vector<32x16xf32>
    %191 = math.exp %190 : vector<32x16xf32>
    %cst_58 = arith.constant dense<0.000000e+00> : vector<32xf32>
    %192 = vector.multi_reduction <add>, %191, %cst_58 [1] : vector<32x16xf32> to vector<32xf32>
    %193 = vector.shape_cast %192 : vector<32xf32> to vector<32x1xf32>
    %194 = vector.broadcast %193 : vector<32x1xf32> to vector<32x16xf32>
    %195 = arith.divf %191, %194 : vector<32x16xf32>
    %cst_59 = arith.constant dense<0.000000e+00> : vector<32x32xf32>
    %196 = tpu.matmul %195, %178, %cst_59 {dimension_numbers = #tpu.dot_dimension_numbers<[1], [0], [0], [1], [0, 0, 1, 1], [], []>} : vector<32x16xf32>, vector<16x32xf32>, vector<32x32xf32> -> vector<32x32xf32>
    %197 = vector.shape_cast %196 : vector<32x32xf32> to vector<4x8x32xf32>
    %198 = vector.broadcast %18 : vector<4x1x32xf32> to vector<4x8x32xf32>
    %199 = arith.mulf %197, %198 : vector<4x8x32xf32>
    %cst_60 = arith.constant dense<0.000000e+00> : vector<8x32xf32>
    %200 = vector.multi_reduction <add>, %199, %cst_60 [0] : vector<4x8x32xf32> to vector<8x32xf32>
    %c2_61 = arith.constant 2 : index
    %c0_62 = arith.constant 0 : index
    %c0_63 = arith.constant 0 : index
    %201 = vector.load %arg4[%c2_61, %c0_62, %c0_63] : memref<3x32x32xf32, #tpu.memory_space<vmem>>, vector<1x32x32xf32>
    %202 = vector.shape_cast %201 : vector<1x32x32xf32> to vector<32x32xf32>
    %203 = vector.extract_strided_slice %5 {offsets = [8, 0], sizes = [1, 32], strides = [1, 1]} : vector<10x32xf32> to vector<1x32xf32>
    %cst_64 = arith.constant dense<0.000000e+00> : vector<8x32xf32>
    %204 = tpu.matmul %200, %202, %cst_64 {dimension_numbers = #tpu.dot_dimension_numbers<[1], [0], [0], [1], [0, 0, 1, 1], [], []>} : vector<8x32xf32>, vector<32x32xf32>, vector<8x32xf32> -> vector<8x32xf32>
    %205 = vector.broadcast %203 : vector<1x32xf32> to vector<8x32xf32>
    %206 = arith.addf %204, %205 : vector<8x32xf32>
    %207 = arith.addf %80, %206 : vector<8x32xf32>
    %208 = tpu.concatenate %207, %142 in 0 : vector<8x32xf32>, vector<16x32xf32> -> vector<24x32xf32>
    %c0_65 = arith.constant 0 : index
    %c0_66 = arith.constant 0 : index
    %209 = vector.load %arg5[%c0_65, %c0_66] : memref<32x128xf32, #tpu.memory_space<vmem>>, vector<32x128xf32>
    %cst_67 = arith.constant dense<0.000000e+00> : vector<24x128xf32>
    %210 = tpu.matmul %208, %209, %cst_67 {dimension_numbers = #tpu.dot_dimension_numbers<[1], [0], [0], [1], [0, 0, 1, 1], [], []>} : vector<24x32xf32>, vector<32x128xf32>, vector<24x128xf32> -> vector<24x128xf32>
    %c0_68 = arith.constant 0 : index
    %c0_69 = arith.constant 0 : index
    %211 = vector.load %arg8[%c0_68, %c0_69] : memref<1x128xf32, #tpu.memory_space<vmem>>, vector<1x128xf32>
    %212 = vector.broadcast %211 : vector<1x128xf32> to vector<24x128xf32>
    %213 = arith.addf %210, %212 : vector<24x128xf32>
    %cst_70 = arith.constant 0.000000e+00 : f32
    %214 = vector.broadcast %cst_70 : f32 to vector<24x128xf32>
    %215 = arith.maximumf %213, %214 : vector<24x128xf32>
    %c0_71 = arith.constant 0 : index
    %c0_72 = arith.constant 0 : index
    %216 = vector.load %arg6[%c0_71, %c0_72] : memref<128x32xf32, #tpu.memory_space<vmem>>, vector<128x32xf32>
    %cst_73 = arith.constant dense<0.000000e+00> : vector<24x32xf32>
    %217 = tpu.matmul %215, %216, %cst_73 {dimension_numbers = #tpu.dot_dimension_numbers<[1], [0], [0], [1], [0, 0, 1, 1], [], []>} : vector<24x128xf32>, vector<128x32xf32>, vector<24x32xf32> -> vector<24x32xf32>
    %218 = vector.extract_strided_slice %5 {offsets = [9, 0], sizes = [1, 32], strides = [1, 1]} : vector<10x32xf32> to vector<1x32xf32>
    %219 = vector.broadcast %218 : vector<1x32xf32> to vector<24x32xf32>
    %220 = arith.addf %217, %219 : vector<24x32xf32>
    %221 = vector.extract_strided_slice %220 {offsets = [0, 0], sizes = [8, 32], strides = [1, 1]} : vector<24x32xf32> to vector<8x32xf32>
    %222 = arith.addf %207, %221 : vector<8x32xf32>
    %223 = vector.extract_strided_slice %220 {offsets = [8, 0], sizes = [16, 32], strides = [1, 1]} : vector<24x32xf32> to vector<16x32xf32>
    %224 = arith.addf %142, %223 : vector<16x32xf32>
    %c0_74 = arith.constant 0 : index
    %c0_75 = arith.constant 0 : index
    %c0_76 = arith.constant 0 : index
    %225 = vector.load %arg10[%c0_74, %c0_75, %c0_76] : memref<1x8x32xf32, #tpu.memory_space<vmem>>, vector<1x8x32xf32>
    %226 = vector.shape_cast %225 : vector<1x8x32xf32> to vector<8x32xf32>
    %227 = vector.shape_cast %222 : vector<8x32xf32> to vector<1x8x32xf32>
    tpu.vector_store %arg10[%c0_74, %c0_75, %c0_76], %227 {strides = array<i32>} : memref<1x8x32xf32, #tpu.memory_space<vmem>>, vector<1x8x32xf32>,
    %c0_77 = arith.constant 0 : index
    %c0_78 = arith.constant 0 : index
    %c0_79 = arith.constant 0 : index
    %228 = vector.load %arg11[%c0_77, %c0_78, %c0_79] : memref<1x16x32xf32, #tpu.memory_space<vmem>>, vector<1x16x32xf32>
    %229 = vector.shape_cast %228 : vector<1x16x32xf32> to vector<16x32xf32>
    %230 = vector.shape_cast %224 : vector<16x32xf32> to vector<1x16x32xf32>
    tpu.vector_store %arg11[%c0_77, %c0_78, %c0_79], %230 {strides = array<i32>} : memref<1x16x32xf32, #tpu.memory_space<vmem>>, vector<1x16x32xf32>,
    return
  }
  func.func @transform_0(%arg0: i32) -> (i32, i32, i32) {
    %c0_i32 = arith.constant 0 : i32
    %c0_i32_0 = arith.constant 0 : i32
    %c0_i32_1 = arith.constant 0 : i32
    return %arg0, %c0_i32, %c0_i32_0 : i32, i32, i32
  }
  func.func @transform_1(%arg0: i32) -> (i32, i32, i32) {
    %c0_i32 = arith.constant 0 : i32
    %c0_i32_0 = arith.constant 0 : i32
    %c0_i32_1 = arith.constant 0 : i32
    return %arg0, %c0_i32, %c0_i32_0 : i32, i32, i32
  }
  func.func @transform_2(%arg0: i32) -> (i32, i32, i32) {
    %c0_i32 = arith.constant 0 : i32
    %c0_i32_0 = arith.constant 0 : i32
    %c0_i32_1 = arith.constant 0 : i32
    %c0_i32_2 = arith.constant 0 : i32
    return %c0_i32, %c0_i32_0, %c0_i32_1 : i32, i32, i32
  }
  func.func @transform_3(%arg0: i32) -> (i32, i32, i32) {
    %c0_i32 = arith.constant 0 : i32
    %c0_i32_0 = arith.constant 0 : i32
    %c0_i32_1 = arith.constant 0 : i32
    %c0_i32_2 = arith.constant 0 : i32
    return %c0_i32, %c0_i32_0, %c0_i32_1 : i32, i32, i32
  }
  func.func @transform_4(%arg0: i32) -> (i32, i32) {
    %c0_i32 = arith.constant 0 : i32
    %c0_i32_0 = arith.constant 0 : i32
    %c0_i32_1 = arith.constant 0 : i32
    return %c0_i32, %c0_i32_0 : i32, i32
  }
  func.func @transform_5(%arg0: i32) -> (i32, i32) {
    %c0_i32 = arith.constant 0 : i32
    %c0_i32_0 = arith.constant 0 : i32
    %c0_i32_1 = arith.constant 0 : i32
    return %c0_i32, %c0_i32_0 : i32, i32
  }
  func.func @transform_6(%arg0: i32) -> (i32, i32) {
    %c0_i32 = arith.constant 0 : i32
    %c0_i32_0 = arith.constant 0 : i32
    %c0_i32_1 = arith.constant 0 : i32
    return %c0_i32, %c0_i32_0 : i32, i32
  }
  func.func @transform_7(%arg0: i32) -> (i32, i32) {
    %c0_i32 = arith.constant 0 : i32
    %c0_i32_0 = arith.constant 0 : i32
    %c0_i32_1 = arith.constant 0 : i32
    return %c0_i32, %c0_i32_0 : i32, i32
  }
  func.func @transform_8(%arg0: i32) -> (i32, i32) {
    %c0_i32 = arith.constant 0 : i32
    %c0_i32_0 = arith.constant 0 : i32
    %c0_i32_1 = arith.constant 0 : i32
    return %c0_i32, %c0_i32_0 : i32, i32
  }
  func.func @transform_9(%arg0: i32) -> (i32, i32, i32) {
    %c0_i32 = arith.constant 0 : i32
    %c0_i32_0 = arith.constant 0 : i32
    %c0_i32_1 = arith.constant 0 : i32
    return %arg0, %c0_i32, %c0_i32_0 : i32, i32, i32
  }
  func.func @transform_10(%arg0: i32) -> (i32, i32, i32) {
    %c0_i32 = arith.constant 0 : i32
    %c0_i32_0 = arith.constant 0 : i32
    %c0_i32_1 = arith.constant 0 : i32
    return %arg0, %c0_i32, %c0_i32_0 : i32, i32, i32
  }
}

</mosaic_0001>

<bundles_post_ra>
// kernel: cross_attention_block.1
= control target key start
LH: loop header
LB: loop body
LE: loop exit
PB: predicated region body
PF: predicated region fallthrough
CT: control target
= control target key end

     0   :  { %s4052_s0 = inlined_call_operand.vmem [shape: f32[2,8,32], index: 0, kind: input, shape index: {}]   ;;  %s4053_s1 = inlined_call_operand.vmem [shape: f32[2,16,32], index: 1, kind: input, shape index: {}]   ;;  %s4054_s2 = inlined_call_operand.vmem [shape: f32[3,32,96], index: 2, kind: input, shape index: {}]   ;;  %s4055_s3 = inlined_call_operand.hbm [shape: f32[3,32,32], index: 3, kind: input, shape index: {}]   ;;  %s4056_s4 = inlined_call_operand.vmem [shape: f32[32,128], index: 4, kind: input, shape index: {}]   ;;  %s4057_s5 = inlined_call_operand.vmem [shape: f32[128,32], index: 5, kind: input, shape index: {}]   ;;  %s4058_s6 = inlined_call_operand.hbm [shape: f32[3,96], index: 6, kind: input, shape index: {}]   ;;  %s4059_s7 = inlined_call_operand.vmem [shape: f32[1,128], index: 7, kind: input, shape index: {}]   ;;  %s4060_s8 = inlined_call_operand.hbm [shape: f32[10,32], index: 8, kind: input, shape index: {}]   ;;  %s4061_s9 = inlined_call_operand.hbm [shape: f32[2,8,32], index: 9, kind: output, shape index: {0}]   ;;  %s4062_s10 = inlined_call_operand.hbm [shape: f32[2,16,32], index: 10, kind: output, shape index: {1}]  }
   0x1   :  { %4070 = sst [smem:[#allocation19_spill]] %s4058_s6 }
   0x2   :  { %16 = vsyncpa [#allocation3], 0 }
   0x3   :  { %17 = vsyncpa [#allocation6], 0 }
   0x4   :  { %18 = vsyncpa [#allocation4], 0 }
   0x5   :  { %20 = vsyncpa [#allocation4 + $0x1], 0 }
   0x6   :  { %21 = vsyncpa [#allocation10], 0 }
   0x7   :  { %23 = vsyncpa [#allocation10 + $0x1], 0  ;;  %s3380_s13 = smov 0   ;;  %s3382_s14 = smov 0  }
   0x8   :  { %s3384_s15 = smov 0   ;;  %s3386_s16 = smov 0  }
   0x9 LB: > { %4071 = sst [smem:[#allocation15_spill]] %s3305_s15  ;;  %s3401_s17 = sadd.s32 4294967295, %s3309_s16   ;;  %s3309_s16 = sphi %s3386_s16, %s4091_s16   ;;  %s3305_s15 = sphi %s3384_s15, %s4093_s15   ;;  %s3301_s14 = sphi %s3382_s14, %s4095_s14   ;;  %s3297_s13 = sphi %s3380_s13, %s4094_s13  }
   0xa   : > { %s2453_s18 = sadd.s32 4294967294, %s3309_s16   ;;  %s3405_s19 = sadd.s32 1, %s3309_s16  }
   0xb   : > { %4072 = sst [smem:[#allocation16_spill]] %s3405_s19  ;;  %s235_s20 = sadd.s32 1, %s3305_s15 }
   0xc   : > { %s232_s21 = ssub.s32 %s3309_s16, %s3405_s19  ;;  %p245_p0 = scmp.ne.s32.totalorder %s3305_s15, %s3301_s14 }
   0xd   : > { %p233_p1 = scmp.eq.s32.totalorder %s232_s21, 0  ;;  %p246_p2 = scmp.eq.s32.totalorder %s3401_s17, 1 }
   0xe   : > { %p251_p3 = scmp.ne.s32.totalorder %s3301_s14, %s3297_s13  ;;  %p252_p4 = scmp.eq.s32.totalorder %s2453_s18, 1 }
   0xf   : > { %s3416_s22 = scalar_select %p233_p1, %s3305_s15, %s235_s20  }
  0x10   : > { %p3418_p5 = por %p246_p2, %p245_p0  ;;  %p3422_p6 = por %p252_p4, %p251_p3 }
  0x11   : > { %4073 = sst [smem:[#allocation17_spill]] %s3416_s22  ;;  %p2454_p7 = scmp.ge.s32.totalorder %s3309_s16, 1 }
  0x12   : > { %s4074_s23 = scalar_select %p3418_p5, 1, 0 }
  0x13   : > { %s4075_s24 = scalar_select %p3422_p6, 1, 0 }
  0x14   : > { %p285_p8 = scmp.lt.s32.totalorder %s3309_s16, 3  ;;  %p4064_p9 = scmp.eq.s32.totalorder %s3401_s17, 0 }
  0x15   : > { %4076 = sst [smem:[#allocation18_spill]] %s4075_s24  ;;  %s3311_s26 = smov [#allocation5]  }
  0x16   : > { %p3429_p10 = pnand %p2454_p7, %p285_p8  ;;  %s320_s27 = sshll.u32 %s3311_s26, 4  ;;  %s321_s27 = int_to_ptr.vmem [resolvable:$true] %s320_s27 }
  0x17   : > { %s3312_s28 = smov [#allocation2]   ;;  %s3313_s11 = smov [#allocation7]  }
  0x18   : > { %s4077_s25 = scalar_select %p3429_p10, 1, 0 }
  0x19   : > { %p2963_p11 = pneg %p3429_p10  ;;  %s300_s29 = sshll.u32 %s3312_s28, 4  ;;  %s3441_s29 = int_to_ptr.vmem [resolvable:$true] %s300_s29 }
  0x1a   : > { %s3443_s12 = sshll.u32 %s3313_s11, 4  ;;  %s4079_s6 = sld [smem:[#allocation19_spill]]  ;;  %s334_s12 = int_to_ptr.vmem [resolvable:$true] %s3443_s12 }
  0x1b   : > { %p3437_p12 = pnand %p4064_p9, %p2963_p11 }
  0x1d   : > { %p3453_p0 = pneg %p3437_p12 }
  0x20   : > { %s3123_s21 = scalar_lea.hbm %s4079_s6, 64 }
  0x21   : > { %p3124_p13 = scmp.ne.s32.totalorder %s4079_s6, %s3123_s21  ;;  %p3130_p3 = scmp.lt.u32.totalorder %s3123_s21, %s4079_s6 }
  0x23   : > { %p3126_p1 = pnand %p3453_p0, %p3124_p13 }
  0x25   : > { %p3127_p2 = pneg %p3126_p1 }
  0x27   : > { %p3132_p4 = pnand %p3130_p3, %p3127_p2 }
  0x29   : > { %3135 = shalt.err (!%p3132_p4)
}
  0x2a   : > { %s3136_s18 = scalar_lea.vmem %s321_s27, 64  ;;  %p3144_p9 = scmp.lt.s32.totalorder %s321_s27, %s321_s27 }
  0x2b   : > { %p3137_p7 = scmp.ne.s32.totalorder %s321_s27, %s3136_s18  ;;  %p3145_p6 = scmp.lt.s32.totalorder %s3136_s18, %s3136_s18 }
  0x2d   : > { %p3139_p8 = pnand %p3137_p7, %p3453_p0  ;;  %p3146_p5 = por %p3145_p6, %p3144_p9 }
  0x2f   : > { %p3140_p11 = pneg %p3139_p8 }
  0x31   : > { %p3147_p10 = pnand %p3146_p5, %p3140_p11 }
  0x33   : > { %3150 = shalt.err (!%p3147_p10)
}
  0x34   : > { %2969 = dma.hbm_to_vmem [thread:$0]  (!%p3437_p12), %s4079_s6, 64, %s321_s27, [#allocation6]  }
  0x35   : > { %s3151_s26 = scalar_lea.hbm %s4055_s3, 1536 }
  0x36   : > { %p3152_p13 = scmp.ne.s32.totalorder %s4055_s3, %s3151_s26  ;;  %p3158_p5 = scmp.lt.u32.totalorder %s3151_s26, %s4055_s3 }
  0x38   : > { %p3154_p1 = pnand %p3152_p13, %p3453_p0 }
  0x3a   : > { %p3155_p6 = pneg %p3154_p1 }
  0x3c   : > { %p3160_p9 = pnand %p3158_p5, %p3155_p6 }
  0x3e   : > { %3163 = shalt.err (!%p3160_p9)
}
  0x3f   : > { %s3164_s27 = scalar_lea.vmem %s3441_s29, 1536  ;;  %p3172_p4 = scmp.lt.s32.totalorder %s3441_s29, %s3441_s29 }
  0x40   : > { %p3165_p10 = scmp.ne.s32.totalorder %s3441_s29, %s3164_s27  ;;  %p3173_p7 = scmp.lt.s32.totalorder %s3164_s27, %s3164_s27 }
  0x42   : > { %p3167_p2 = pnand %p3165_p10, %p3453_p0  ;;  %p3174_p8 = por %p3173_p7, %p3172_p4 }
  0x44   : > { %p3168_p3 = pneg %p3167_p2 }
  0x46   : > { %p3175_p11 = pnand %p3174_p8, %p3168_p3 }
  0x48   : > { %3178 = shalt.err (!%p3175_p11)
}
  0x49   : > { %s3314_s19 = smov 128   ;;  %s3315_s24 = smov 8  }
  0x4a   : > { %2966 = dma.hbm_to_vmem [thread:$0]  (!%p3437_p12), %s4055_s3, 1536, %s3441_s29, [#allocation3], %s3314_s19, %s3314_s19, %s3315_s24  }
  0x4b   : > { %s3179_s26 = scalar_lea.hbm %s4060_s8, 256 }
  0x4c   : > { %p3180_p13 = scmp.ne.s32.totalorder %s4060_s8, %s3179_s26  ;;  %p3186_p5 = scmp.lt.u32.totalorder %s3179_s26, %s4060_s8 }
  0x4e   : > { %p3182_p1 = pnand %p3180_p13, %p3453_p0 }
  0x50   : > { %p3183_p6 = pneg %p3182_p1 }
  0x52   : > { %p3188_p9 = pnand %p3186_p5, %p3183_p6 }
  0x54   : > { %3191 = shalt.err (!%p3188_p9)
}
  0x55   : > { %s3192_s22 = scalar_lea.vmem %s334_s12, 256  ;;  %p3200_p4 = scmp.lt.s32.totalorder %s334_s12, %s334_s12 }
  0x56   : > { %p3193_p10 = scmp.ne.s32.totalorder %s334_s12, %s3192_s22  ;;  %p3201_p7 = scmp.lt.s32.totalorder %s3192_s22, %s3192_s22 }
  0x58   : > { %p3195_p2 = pnand %p3193_p10, %p3453_p0  ;;  %p3202_p8 = por %p3201_p7, %p3200_p4 }
  0x5a   : > { %p3196_p3 = pneg %p3195_p2 }
  0x5c   : > { %p3203_p11 = pnand %p3202_p8, %p3196_p3 }
  0x5e   : > { %3206 = shalt.err (!%p3203_p11)
}
  0x5f   : > { %2972 = dma.hbm_to_vmem [thread:$0]  (!%p3437_p12), %s4060_s8, 256, %s334_s12, [#allocation6], %s3314_s19, %s3314_s19, %s3315_s24  }
  0x60   : > { %p4081_p13 = scmp.ne.s32.totalorder %s4077_s25, 0 }
  0x61   : > { %p4082_p1 = scmp.eq.s32.totalorder (!%p4081_p13), %s3401_s17, 0 }
  0x62   : > { %364 = sbr.rel (%p4081_p13) target bundleno = 4284 (0x10bc), region = 56 }
  0x69   : > { %3280 = dma.done.wait (%p4082_p1), [#allocation3], 1536   ;;  %p4083_p0 = pmov %p4082_p1 }
  0x6b   : > { %3282 = vsyncadd (%p4083_p0), [#allocation3], 4294965760  ;;  %p4084_p6 = pmov %p4083_p0 }
  0x6c   : > { %p4085_p5 = pmov %p4083_p0 }
  0x6d   : > { %3284 = dma.done.wait (%p4084_p6), [#allocation6], 320  }
  0x6e   : > { %3286 = vsyncadd (%p4085_p5), [#allocation6], 4294966976  ;;  %p419_p9 = scmp.lt.s32.totalorder %s3401_s17, 1  ;;  %vm456_vm0 = vcmask 261120   ;;  %v483_v4 = vld [vmem:[%s4054_s2] sm:$0xff]  ;;  %v484_v5 = vld [vmem:[%s4054_s2 + $0x8] sm:$0xff]  ;;  %v434_v18 = vlaneseq }
  0x6f   : > { %v485_v6 = vld [vmem:[%s4054_s2 + $0x10] sm:$0xff]  ;;  %v3316_v7 = vmov 0.0|0.0   ;;  %v2850_v8 = vpack.c.bf16 %v484_v5, %v483_v4  ;;  %v486_v9 = vld [vmem:[%s4054_s2 + $0x18] sm:$0xff]  ;;  %vm3317_vm1 = vmmov 0   ;;  %v3318_v10 = vmov 0.0   ;;  %v3557_v22 = vld [vmem:[#allocation7] sm:$0xff] }
  0x70   : > { %s3523_s6 = scalar_select %p419_p9, %s3401_s17, 1  ;;  %2849 = vmatprep.subr.bf16.mxu0 %v3316_v7  ;;  %2654 = vmatprep.mubr.msk.f32.mxu0 %vm3317_vm1, %v3318_v10  ;;  %v2853_v11 = vpack.c.bf16 %v486_v9, %v485_v6  ;;  %v3552_v20 = vshrl.u32 %v434_v18, 7  ;;  %v435_v31 = vand.u32 127, %v434_v18  ;;  %v3565_v32 = vld [vmem:[#allocation5] sm:$0x7]  ;;  %vm674_vm12 = vcmask 64512   ;;  %vm3680_vm13 = vmpackc.low %vm456_vm0, %vm456_vm0 }
  0x71   : > { %2851 = vmatpush3.bf16.msra.mxu0 %v2850_v8  ;;  %s3319_s22 = smov 96   ;;  %vm1199_vm14 = vcmask 130048   ;;  %p4088_p10 = scmp.ne.s32.totalorder %s4074_s23, 0 }
  0x72   : > { %s2465_s25 = sshll.u32 %s3523_s6, 3  ;;  %2852 = vmatprep.subr.bf16.mxu0 %v3316_v7  ;;  %v3555_v21 = vsub.s32 0, %v3552_v20  ;;  %v480_v23 = vsub.s32 3, %v3552_v20  ;;  %vm440_vm2 = vcmp.lt.s32.totalorder %v435_v31, 8  ;;  %vm437_vm3 = vcmp.ge.s32.totalorder %v435_v31, 8  ;;  %s2538_s29 = sshll.u32 %s3523_s6, 4 }
  0x73   : > { %s422_s28 = scalar_lea.vmem %s4052_s0, %s2465_s25  ;;  %v3570_v35 = vsel %vm440_vm2, 1.0, %v3318_v10  ;;  %vm441_vm4 = vcmp.lt.s32.totalorder %v435_v31, 16  ;;  %vm438_vm5 = vcmp.ge.s32.totalorder %v435_v31, 16  ;;  %vm442_vm6 = vcmp.lt.s32.totalorder %v435_v31, 24  ;;  %s427_s30 = scalar_lea.vmem %s4053_s1, %s2538_s29 }
  0x74   : > { %v3529_v0 = vld [vmem:[%s422_s28] sm:$0xff]  ;;  %v476_v25 = vrot.slane %v3557_v22, %v3555_v21  ;;  %v481_v28 = vrot.slane %v3557_v22, %v480_v23  ;;  %v490_v33 = vrot.slane %v3565_v32, %v3555_v21  ;;  %vm445_vm7 = vmand %vm437_vm3, %vm441_vm4  ;;  %vm439_vm9 = vcmp.ge.s32.totalorder %v435_v31, 24  ;;  %v3614_v60 = vld [vmem:[%s427_s30 + $0x8] sm:$0xff]  ;;  %s3320_s6 = smov 64   ;;  %s3961_s29 = sand.u32 1, %s3301_s14  }
  0x75   : > { %v457_v1 = vsel %vm456_vm0, %v3529_v0, 0.0  ;;  %v462_v2 = vmul.f32 %v3529_v0, %v3529_v0  ;;  %2854 = vmatpush3.bf16.msra.mxu0 %v2853_v11  ;;  %vm446_vm8 = vmand %vm438_vm5, %vm442_vm6  ;;  %vm443_vm10 = vcmp.lt.s32.totalorder %v435_v31, 32  ;;  %v3580_v40 = vsel %vm445_vm7, 1.0, %v3318_v10  ;;  %v3609_v57 = vld [vmem:[%s427_s30] sm:$0xff]  ;;  %s2463_s20 = sshll.u32 %s3961_s29, 3  ;;  %s2533_s25 = sshll.u32 %s3401_s17, 7 }
  0x76   : > { %458 = vadd.xlane.f32.xlu0 %v457_v1  ;;  %v3584_v41 = vsel %vm446_vm8, 1.0, %v3318_v10  ;;  %vm447_vm11 = vmand %vm439_vm9, %vm443_vm10  ;;  %v912_v59 = vsel %vm456_vm0, %v3609_v57, 0.0  ;;  %v915_v61 = vsel %vm456_vm0, %v3614_v60, 0.0  ;;  %v920_v62 = vmul.f32 %v3609_v57, %v3609_v57  ;;  %s411_s30 = scalar_lea.vmem [#allocation8], %s2463_s20  ;;  %s2464_s28 = sshll.u32 %s3961_s29, 4 }
  0x77   : > { %v463_v3 = vsel %vm456_vm0, %v462_v2, 0.0  ;;  %v3593_v44 = vsel %vm447_vm11, 1.0, %v3318_v10  ;;  %v921_v1 = vmul.f32 %v3614_v60, %v3614_v60  ;;  %s2303_s12 = sshll.u32 %s411_s30, 4  ;;  %s3970_s19 = scalar_lea.hbm %s4061_s9, %s2533_s25  ;;  %s3972_s12 = int_to_ptr.vmem [resolvable:$true] %s2303_s12 }
  0x78   : > { %v922_v63 = vsel %vm456_vm0, %v920_v62, 0.0  ;;  %s2285_s24 = scalar_lea.sflag [#allocation4], %s3961_s29  ;;  %s3207_s15 = scalar_lea.vmem %s3972_s12, 128 }
  0x79   : > { %v925_v2 = vsel %vm456_vm0, %v921_v1, 0.0  ;;  %v2485_v1 = vld [vmem:[%s4054_s2 + $0x30] sm:$0xff]  ;;  %p3208_p12 = scmp.ne.s32.totalorder %s3972_s12, %s3207_s15  ;;  %s3321_s21 = smov [#allocation8]  }
  0x7a   : > { %464 = vadd.xlane.f32.xlu0 %v463_v3  ;;  %s3211_s26 = sshll.u32 %s3321_s21, 4  ;;  %s3212_s26 = int_to_ptr.vmem [resolvable:$false] %s3211_s26 }
  0x7b   : > { %p3209_p2 = pnand %p3208_p12, %p4088_p10  ;;  %s3213_s11 = scalar_lea.vmem %s3212_s26, 256 }
  0x7c   : > { %p3214_p4 = scmp.lt.s32.totalorder %s3972_s12, %s3212_s26  ;;  %p3215_p7 = scmp.lt.s32.totalorder %s3213_s11, %s3207_s15 }
  0x7d   : > { %p3210_p3 = pneg %p3209_p2 }
  0x7e   : > { %p3216_p8 = por %p3215_p7, %p3214_p4 }
  0x80   : > { %p3217_p11 = pnand %p3216_p8, %p3210_p3 }
 0x103   : > { %v459_v12 = vpop.xlane.xlu0 %458 }
 0x104   : > { %v461_v13 = vmul.f32 0.03125, %v459_v12 }
 0x106   : > { %v467_v15 = vmul.f32 %v461_v13, %v461_v13  ;;  %v469_v24 = vsub.f32 %v3529_v0, %v461_v13 }
 0x107   : > { %v465_v14 = vpop.xlane.xlu0 %464 }
 0x108   : > { %v466_v16 = vmul.f32 0.03125, %v465_v14 }
 0x10a   : > { %v468_v17 = vsub.f32 %v466_v16, %v467_v15 }
 0x10c   : > { %v470_v19 = vadd.f32 1e-05, %v468_v17 }
 0x10e   : > { %3051 = vrsqrt.f32 %v470_v19 }
 0x118   : > { %v3052_v26 = vpop.eup %3051 }
 0x119   : > { %v472_v27 = vmul.f32 %v3052_v26, %v469_v24 }
 0x11b   : > { %v477_v29 = vmul.f32 %v476_v25, %v472_v27 }
 0x11d   : > { %v482_v30 = vadd.f32 %v481_v28, %v477_v29 }
 0x11f   : > { %2655 = vmatmul.mubr.msk.f32.vlgmr.msra.gmra.mrb[0].mxu0 %vm456_vm0, %v482_v30 }
 0x1f2   : > { %v560_v34 = vpop.f32.mrb[0].mxu0 }
 0x1f3   : > { %v3572_v36 = vadd.f32 %v560_v34, %v490_v33  ;;  %v2656_v37 = vpop.f32.mrb[1].mxu0 }
 0x1f5   : > { %569 = vrot.lane.b32.xlu1 %v3572_v36, %s3319_s22  ;;  %v564_v38 = vmul.f32 %v3570_v35, %v3572_v36  ;;  %v565_v42 = vmul.f32 %v3580_v40, %v3572_v36  ;;  %v566_v43 = vmul.f32 %v3584_v41, %v3572_v36  ;;  %v567_v45 = vmul.f32 %v3593_v44, %v3572_v36 }
 0x1f7   : > { %2659 = vmatprep.mubr.msk.f32.mxu1 %vm456_vm0, %v564_v38 }
 0x267   : > { %v570_v39 = vpop.permute.xlu1 %569 }
 0x268   : > { %2657 = vmatprep.subr.msk.mxu1 %vm456_vm0, %v570_v39 }
 0x269   : > { %2658 = vmatpush3.xpose.msk.msra.mxu1 %vm456_vm0, %v570_v39 }
 0x26a   : > { %2855 = vmatprep.subr.bf16.mxu1 %v3316_v7 }
 0x26c   : > { %2660 = vmatmul.mubr.msk.f32.vlgmr.msra.gmra.mrb[0].mxu1 %vm456_vm0, %v565_v42 }
 0x26d   : > { %2662 = vmatprep.mubr.msk.f32.mxu1 %vm456_vm0, %v566_v43 }
 0x270   : > { %2663 = vmatmul.mubr.msk.f32.gmra.mrb[2].mxu1 %vm456_vm0, %v567_v45 }
 0x271   : > { %2681 = vmatprep.mubr.msk.f32.mxu1 %vm3317_vm1, %v3318_v10 }
 0x33f   : > { %v2661_v46 = vpop.f32.mrb[0].mxu1 }
 0x340   : > { %v671_v47 = vmul.f32 0.35355338, %v2661_v46  ;;  %v651_v48 = vpop.f32.mrb[1].mxu1 }
 0x341   : > { %v670_v49 = vmul.f32 0.35355338, %v651_v48 }
 0x342   : > { %v678_v50 = vsel %vm674_vm12, %v671_v47, -inf }
 0x343   : > { %679 = vmax.xlane.f32.xlu0 %v678_v50  ;;  %v2664_v51 = vpop.f32.mrb[2].mxu1  ;;  %v675_v52 = vsel %vm674_vm12, %v670_v49, -inf  ;;  %v2483_v50 = vld [vmem:[%s4054_s2 + $0x20] sm:$0xff] }
 0x344   : > { %676 = vmax.xlane.f32.xlu1 %v675_v52  ;;  %v661_v53 = vpop.f32.mrb[3].mxu1  ;;  %v673_v55 = vmul.f32 0.35355338, %v2664_v51  ;;  %v2484_v51 = vld [vmem:[%s4054_s2 + $0x28] sm:$0xff] }
 0x345   : > { %v672_v54 = vmul.f32 0.35355338, %v661_v53  ;;  %v2861_v52 = vpack.c.bf16 %v2484_v51, %v2483_v50 }
 0x346   : > { %v684_v58 = vsel %vm674_vm12, %v673_v55, -inf }
 0x347   : > { %v681_v56 = vsel %vm674_vm12, %v672_v54, -inf }
 0x348   : > { %682 = vmax.xlane.f32.xlu0 %v681_v56 }
 0x34c   : > { %685 = vmax.xlane.f32.xlu0 %v684_v58  ;;  %v3638_v58 = vsub.s32 1, %v3552_v20 }
 0x350   : > { %913 = vadd.xlane.f32.xlu0 %v912_v59 }
 0x354   : > { %916 = vadd.xlane.f32.xlu0 %v915_v61 }
 0x358   : > { %923 = vadd.xlane.f32.xlu0 %v922_v63 }
 0x35c   : > { %926 = vadd.xlane.f32.xlu0 %v925_v2  ;;  %v2486_v2 = vld [vmem:[%s4054_s2 + $0x38] sm:$0xff] }
 0x3d0   : > { %v680_v3 = vpop.xlane.xlu0 %679 }
 0x3d1   : > { %v688_v4 = vsub.f32 %v671_v47, %v680_v3  ;;  %v677_v5 = vpop.xlane.xlu1 %676 }
 0x3d2   : > { %v687_v6 = vsub.f32 %v670_v49, %v677_v5  ;;  %v950_v5 = vsub.s32 4, %v3552_v20 }
 0x3d3   : > { %v693_v8 = vmul.f32 1.442695, %v688_v4  ;;  %v945_v4 = vrot.slane %v3557_v22, %v3638_v58 }
 0x3d4   : > { %v691_v9 = vmul.f32 1.442695, %v687_v6 }
 0x3d5   : > { %v683_v11 = vpop.xlane.xlu0 %682 }
 0x3d6   : > { %3053 = vpow2.f32 %v691_v9  ;;  %v689_v12 = vsub.f32 %v672_v54, %v683_v11 }
 0x3d7   : > { %3055 = vpow2.f32 %v693_v8 }
 0x3d8   : > { %v695_v13 = vmul.f32 1.442695, %v689_v12 }
 0x3d9   : > { %v686_v14 = vpop.xlane.xlu0 %685 }
 0x3da   : > { %3057 = vpow2.f32 %v695_v13  ;;  %v690_v15 = vsub.f32 %v673_v55, %v686_v14  ;;  %v2865_v13 = vpack.c.bf16 %v2486_v2, %v2485_v1 }
 0x3dc   : > { %v697_v16 = vmul.f32 1.442695, %v690_v15  ;;  %v951_v15 = vrot.slane %v3557_v22, %v950_v5 }
 0x3dd   : > { %v914_v28 = vpop.xlane.xlu0 %913 }
 0x3de   : > { %3059 = vpow2.f32 %v697_v16  ;;  %v918_v31 = vmul.f32 0.03125, %v914_v28  ;;  %v833_v28 = vld [vmem:[#allocation2 + $0x18] sm:$0xff] }
 0x3e0   : > { %v3054_v17 = vpop.eup %3053  ;;  %v930_v33 = vmul.f32 %v918_v31, %v918_v31  ;;  %v934_v56 = vsub.f32 %v3609_v57, %v918_v31 }
 0x3e1   : > { %v699_v18 = vsel %vm674_vm12, %v3054_v17, 0.0  ;;  %v3056_v19 = vpop.eup %3055  ;;  %v917_v29 = vpop.xlane.xlu0 %916 }
 0x3e2   : > { %700 = vadd.xlane.f32.xlu0 %v699_v18  ;;  %v702_v24 = vsel %vm674_vm12, %v3056_v19, 0.0  ;;  %v919_v34 = vmul.f32 0.03125, %v917_v29 }
 0x3e4   : > { %v3058_v23 = vpop.eup %3057  ;;  %v931_v39 = vmul.f32 %v919_v34, %v919_v34  ;;  %v935_v62 = vsub.f32 %v3614_v60, %v919_v34 }
 0x3e5   : > { %v705_v25 = vsel %vm674_vm12, %v3058_v23, 0.0  ;;  %v924_v30 = vpop.xlane.xlu0 %923 }
 0x3e6   : > { %703 = vadd.xlane.f32.xlu0 %v702_v24  ;;  %706 = vadd.xlane.f32.xlu1 %v705_v25  ;;  %v928_v37 = vmul.f32 0.03125, %v924_v30  ;;  %v831_v25 = vld [vmem:[#allocation2 + $0x8] sm:$0xff] }
 0x3e8   : > { %v3060_v26 = vpop.eup %3059  ;;  %v932_v42 = vsub.f32 %v928_v37, %v930_v33 }
 0x3e9   : > { %v708_v27 = vsel %vm674_vm12, %v3060_v26, 0.0  ;;  %v927_v38 = vpop.xlane.xlu0 %926 }
 0x3ea   : > { %709 = vadd.xlane.f32.xlu0 %v708_v27  ;;  %v929_v43 = vmul.f32 0.03125, %v927_v38  ;;  %v936_v45 = vadd.f32 1e-05, %v932_v42 }
 0x3ec   : > { %v933_v46 = vsub.f32 %v929_v43, %v931_v39  ;;  %3061 = vrsqrt.f32 %v936_v45  ;;  %v962_v45 = vrot.slane %v3565_v32, %v3638_v58 }
 0x3ee   : > { %v937_v47 = vadd.f32 1e-05, %v933_v46 }
 0x3f6   : > { %v3062_v55 = vpop.eup %3061 }
 0x3f7   : > { %719 = vrot.lane.b32.xlu1 %v3572_v36, %s3320_s6  ;;  %v940_v3 = vmul.f32 %v3062_v55, %v934_v56 }
 0x3f9   : > { %v946_v14 = vmul.f32 %v945_v4, %v940_v3 }
 0x3fb   : > { %v952_v24 = vadd.f32 %v951_v15, %v946_v14 }
 0x46f   : > { %v701_v48 = vpop.xlane.xlu0 %700 }
 0x470   : > { %3063 = vrcp.f32 %v701_v48 }
 0x471   : > { %3065 = vrsqrt.f32 %v937_v47 }
 0x473   : > { %v707_v49 = vpop.xlane.xlu1 %706  ;;  %v704_v36 = vpop.xlane.xlu0 %703 }
 0x474   : > { %3067 = vrcp.f32 %v707_v49 }
 0x475   : > { %3069 = vrcp.f32 %v704_v36 }
 0x477   : > { %v720_v53 = vpop.permute.xlu1 %719  ;;  %v710_v54 = vpop.xlane.xlu0 %709 }
 0x478   : > { %3071 = vrcp.f32 %v710_v54  ;;  %2665 = vmatprep.subr.mxu0 %v720_v53 }
 0x479   : > { %2666 = vmatpush3.msra.mxu0 %v720_v53 }
 0x47a   : > { %v3064_v59 = vpop.eup %3063  ;;  %2862 = vmatprep.subr.bf16.mxu0 %v2861_v52 }
 0x47b   : > { %v712_v61 = vmul.f32 %v3064_v59, %v3054_v17  ;;  %v3066_v63 = vpop.eup %3065 }
 0x47c   : > { %v941_v11 = vmul.f32 %v3066_v63, %v935_v62 }
 0x47d   : > { %2667 = vmatprep.mubr.msk.f32.mxu0 %vm674_vm12, %v712_v61 }
 0x47e   : > { %v3068_v6 = vpop.eup %3067  ;;  %v947_v18 = vmul.f32 %v945_v4, %v941_v11 }
 0x47f   : > { %v3070_v8 = vpop.eup %3069  ;;  %v716_v9 = vmul.f32 %v3068_v6, %v3058_v23  ;;  %v830_v23 = vld [vmem:[#allocation2] sm:$0xff] }
 0x480   : > { %v714_v12 = vmul.f32 %v3070_v8, %v3056_v19  ;;  %v953_v19 = vadd.f32 %v951_v15, %v947_v18  ;;  %v2856_v27 = vpack.c.bf16 %v831_v25, %v830_v23 }
 0x482   : > { %v3072_v16 = vpop.eup %3071  ;;  %2668 = vmatmul.mubr.msk.f32.vlgmr.msra.gmra.mrb[2].mxu0 %vm674_vm12, %v714_v12  ;;  %2857 = vmatpush3.bf16.msra.mxu1 %v2856_v27 }
 0x483   : > { %2670 = vmatprep.mubr.msk.f32.mxu0 %vm674_vm12, %v716_v9  ;;  %2864 = vmatpush3.bf16.msra.mxu0 %v2861_v52  ;;  %v718_v17 = vmul.f32 %v3072_v16, %v3060_v26  ;;  %v832_v26 = vld [vmem:[#allocation2 + $0x10] sm:$0xff] }
 0x484   : > { %2866 = vmatprep.subr.bf16.mxu0 %v2865_v13  ;;  %2858 = vmatprep.subr.bf16.mxu1 %v3316_v7  ;;  %v2859_v29 = vpack.c.bf16 %v833_v28, %v832_v26 }
 0x486   : > { %2671 = vmatmul.mubr.msk.f32.gmra.mrb[4].mxu0 %vm674_vm12, %v718_v17  ;;  %2860 = vmatpush3.bf16.msra.mxu1 %v2859_v29 }
 0x487   : > { %2868 = vmatpush3.bf16.msra.mxu0 %v2865_v13  ;;  %2692 = vmatprep.mubr.msk.f32.mxu0 %vm456_vm0, %v952_v24 }
 0x488   : > { %2887 = vmatprep.subr.bf16.mxu0 %v3316_v7 }
 0x48a   : > { %2693 = vmatmul.mubr.msk.f32.vlgmr.msra.gmra.mrb[6].mxu0 %vm456_vm0, %v953_v19 }
 0x48b   : > { %2746 = vmatprep.mubr.msk.f32.mxu0 %vm3317_vm1, %v3318_v10 }
 0x555   : > { %v2669_v30 = vpop.f32.mrb[2].mxu0 }
 0x556   : > { %v820_v31 = vmul.f32 %v2669_v30, %v3580_v40  ;;  %v800_v33 = vpop.f32.mrb[3].mxu0 }
 0x557   : > { %v819_v34 = vmul.f32 %v3570_v35, %v800_v33 }
 0x558   : > { %v824_v37 = vsel %vm456_vm0, %v820_v31, 0.0 }
 0x559   : > { %v823_v38 = vsel %vm456_vm0, %v819_v34, 0.0  ;;  %v2672_v39 = vpop.f32.mrb[4].mxu0 }
 0x55a   : > { %v825_v42 = vadd.f32 %v824_v37, %v823_v38  ;;  %v810_v43 = vpop.f32.mrb[5].mxu0  ;;  %v822_v46 = vmul.f32 %v2672_v39, %v3593_v44 }
 0x55b   : > { %v821_v47 = vmul.f32 %v3584_v41, %v810_v43 }
 0x55c   : > { %v828_v52 = vsel %vm456_vm0, %v822_v46, 0.0 }
 0x55d   : > { %v826_v48 = vsel %vm456_vm0, %v821_v47, 0.0  ;;  %v2694_v49 = vpop.f32.mrb[6].mxu0 }
 0x55e   : > { %v827_v36 = vadd.f32 %v826_v48, %v825_v42  ;;  %v1041_v50 = vadd.f32 %v2694_v49, %v962_v45  ;;  %v1035_v51 = vpop.f32.mrb[7].mxu0 }
 0x55f   : > { %v1036_v53 = vadd.f32 %v1035_v51, %v962_v45 }
 0x560   : > { %v829_v54 = vadd.f32 %v828_v52, %v827_v36  ;;  %v1045_v2 = vmul.f32 %v3570_v35, %v1041_v50  ;;  %v1047_v4 = vmul.f32 %v3580_v40, %v1041_v50  ;;  %v1049_v6 = vmul.f32 %v3584_v41, %v1041_v50 }
 0x561   : > { %v3671_v55 = vpack.i.bf16 %v1041_v50, %v1036_v53  ;;  %v1044_v56 = vmul.f32 %v3570_v35, %v1036_v53  ;;  %v1046_v3 = vmul.f32 %v3580_v40, %v1036_v53  ;;  %v1048_v5 = vmul.f32 %v3584_v41, %v1036_v53 }
 0x562   : > { %2682 = vmatmul.mubr.msk.f32.vlgmr.msra.gmra.mrb[4].mxu1 %vm456_vm0, %v829_v54  ;;  %v1050_v8 = vmul.f32 %v3593_v44, %v1036_v53  ;;  %v1051_v9 = vmul.f32 %v3593_v44, %v1041_v50 }
 0x563   : > { %3032 = vrot.lane.b32.xlu0 %v3671_v55, %s3319_s22  ;;  %2699 = vmatprep.mubr.msk.f32.mxu1 %vm456_vm0, %v1044_v56 }
 0x5d5   : > { %v3033_v59 = vpop.permute.xlu0 %3032 }
 0x5d6   : > { %v3035_v61 = vunpack.i.h.bf16 %v3033_v59  ;;  %v3034_v62 = vunpack.i.l.bf16 %v3033_v59 }
 0x5d8   : > { %v2869_v1 = vpack.c.bf16 %v3035_v61, %v3034_v62 }
 0x5da   : > { %2871 = vmatprep.subr.msk.bf16.mxu1 %vm3680_vm13, %v2869_v1 }
 0x5db   : > { %2874 = vmatpush3.bf16.xpose.msk.msra.mxu1 %vm3680_vm13, %v2869_v1 }
 0x5e2   : > { %2700 = vmatmul.mubr.msk.f32.vlgmr.msra.gmra.mrb[6].mxu1 %vm456_vm0, %v1045_v2 }
 0x5e3   : > { %2702 = vmatprep.mubr.msk.f32.mxu1 %vm456_vm0, %v1046_v3 }
 0x5e6   : > { %2703 = vmatmul.mubr.msk.f32.gmra.mrb[8].mxu1 %vm456_vm0, %v1047_v4 }
 0x5e7   : > { %2705 = vmatprep.mubr.msk.f32.mxu1 %vm456_vm0, %v1048_v5 }
 0x5ea   : > { %2706 = vmatmul.mubr.msk.f32.gmra.mrb[10].mxu1 %vm456_vm0, %v1049_v6 }
 0x5eb   : > { %2708 = vmatprep.mubr.msk.f32.mxu1 %vm456_vm0, %v1050_v8 }
 0x5ee   : > { %2709 = vmatmul.mubr.msk.f32.gmra.mrb[12].mxu1 %vm456_vm0, %v1051_v9 }
 0x635   : > { %v3702_v11 = vpop.f32.mrb[4].mxu1 }
 0x636   : > { %v2683_v12 = vpop.f32.mrb[5].mxu1 }
 0x6b5   : > { %v2701_v13 = vpop.f32.mrb[6].mxu1 }
 0x6b6   : > { %v1192_v14 = vmul.f32 0.35355338, %v2701_v13  ;;  %v1152_v15 = vpop.f32.mrb[7].mxu1 }
 0x6b7   : > { %v1191_v16 = vmul.f32 0.35355338, %v1152_v15  ;;  %v836_v15 = vsub.s32 6, %v3552_v20 }
 0x6b8   : > { %v1203_v17 = vsel %vm1199_vm14, %v1192_v14, -inf }
 0x6b9   : > { %1204 = vmax.xlane.f32.xlu0 %v1203_v17  ;;  %v2704_v18 = vpop.f32.mrb[8].mxu1  ;;  %v1200_v24 = vsel %vm1199_vm14, %v1191_v16, -inf }
 0x6ba   : > { %v1194_v19 = vmul.f32 0.35355338, %v2704_v18  ;;  %1201 = vmax.xlane.f32.xlu1 %v1200_v24  ;;  %v1162_v23 = vpop.f32.mrb[9].mxu1 }
 0x6bb   : > { %v1193_v25 = vmul.f32 0.35355338, %v1162_v23  ;;  %v837_v23 = vrot.slane %v3557_v22, %v836_v15 }
 0x6bc   : > { %v1209_v27 = vsel %vm1199_vm14, %v1194_v19, -inf }
 0x6bd   : > { %1210 = vmax.xlane.f32.xlu0 %v1209_v27  ;;  %v2707_v26 = vpop.f32.mrb[10].mxu1  ;;  %v1206_v28 = vsel %vm1199_vm14, %v1193_v25, -inf }
 0x6be   : > { %v1196_v29 = vmul.f32 0.35355338, %v2707_v26  ;;  %1207 = vmax.xlane.f32.xlu1 %v1206_v28  ;;  %v1172_v30 = vpop.f32.mrb[11].mxu1 }
 0x6bf   : > { %v1195_v31 = vmul.f32 0.35355338, %v1172_v30 }
 0x6c0   : > { %v1215_v33 = vsel %vm1199_vm14, %v1196_v29, -inf }
 0x6c1   : > { %1216 = vmax.xlane.f32.xlu0 %v1215_v33  ;;  %v2710_v34 = vpop.f32.mrb[12].mxu1  ;;  %v1212_v37 = vsel %vm1199_vm14, %v1195_v31, -inf }
 0x6c2   : > { %v1198_v38 = vmul.f32 0.35355338, %v2710_v34  ;;  %1213 = vmax.xlane.f32.xlu1 %v1212_v37  ;;  %v1182_v39 = vpop.f32.mrb[13].mxu1 }
 0x6c3   : > { %v1197_v42 = vmul.f32 0.35355338, %v1182_v39 }
 0x6c4   : > { %v1221_v43 = vsel %vm1199_vm14, %v1198_v38, -inf }
 0x6c5   : > { %1222 = vmax.xlane.f32.xlu0 %v1221_v43  ;;  %v1218_v45 = vsel %vm1199_vm14, %v1197_v42, -inf }
 0x6c6   : > { %1219 = vmax.xlane.f32.xlu1 %v1218_v45  ;;  %v2510_v45 = vld [vmem:[%s4054_s2 + $0x48] sm:$0xff] }
 0x746   : > { %v1205_v46 = vpop.xlane.xlu0 %1204 }
 0x747   : > { %v1225_v47 = vsub.f32 %v1192_v14, %v1205_v46  ;;  %v1202_v48 = vpop.xlane.xlu1 %1201 }
 0x748   : > { %v1224_v49 = vsub.f32 %v1191_v16, %v1202_v48  ;;  %v2512_v48 = vld [vmem:[%s4054_s2 + $0x58] sm:$0xff] }
 0x749   : > { %v1234_v36 = vmul.f32 1.442695, %v1225_v47  ;;  %v2511_v47 = vld [vmem:[%s4054_s2 + $0x50] sm:$0xff] }
 0x74a   : > { %v1232_v50 = vmul.f32 1.442695, %v1224_v49  ;;  %v1211_v51 = vpop.xlane.xlu0 %1210 }
 0x74b   : > { %3073 = vpow2.f32 %v1234_v36  ;;  %v1227_v52 = vsub.f32 %v1194_v19, %v1211_v51  ;;  %v1208_v53 = vpop.xlane.xlu1 %1207 }
 0x74c   : > { %3075 = vpow2.f32 %v1232_v50  ;;  %v1226_v54 = vsub.f32 %v1193_v25, %v1208_v53 }
 0x74d   : > { %v1238_v56 = vmul.f32 1.442695, %v1227_v52 }
 0x74e   : > { %v1236_v59 = vmul.f32 1.442695, %v1226_v54  ;;  %v1217_v61 = vpop.xlane.xlu0 %1216 }
 0x74f   : > { %3077 = vpow2.f32 %v1238_v56  ;;  %v1229_v62 = vsub.f32 %v1196_v29, %v1217_v61  ;;  %v1214_v1 = vpop.xlane.xlu1 %1213  ;;  %v908_v29 = vadd.f32 %v3702_v11, %v837_v23 }
 0x750   : > { %3079 = vpow2.f32 %v1236_v59  ;;  %v1228_v2 = vsub.f32 %v1195_v31, %v1214_v1 }
 0x751   : > { %v1242_v3 = vmul.f32 1.442695, %v1229_v62  ;;  %v3741_v37 = vadd.f32 %v908_v29, %v3529_v0  ;;  %v2509_v0 = vld [vmem:[%s4054_s2 + $0x40] sm:$0xff] }
 0x752   : > { %v1240_v4 = vmul.f32 1.442695, %v1228_v2  ;;  %v1223_v5 = vpop.xlane.xlu0 %1222  ;;  %v3760_v46 = vpack.c.bf16 %v2510_v45, %v2509_v0 }
 0x753   : > { %3081 = vpow2.f32 %v1242_v3  ;;  %v1231_v6 = vsub.f32 %v1198_v38, %v1223_v5  ;;  %v1220_v8 = vpop.xlane.xlu1 %1219  ;;  %v1537_v39 = vsel %vm456_vm0, %v3741_v37, 0.0 }
 0x754   : > { %3083 = vpow2.f32 %v1240_v4  ;;  %v1230_v9 = vsub.f32 %v1197_v42, %v1220_v8  ;;  %v1541_v42 = vmul.f32 %v3741_v37, %v3741_v37  ;;  %2889 = vmatpush3.bf16.msra.mxu0 %v3760_v46 }
 0x755   : > { %v3712_v12 = vpop.eup %3073  ;;  %v1246_v13 = vmul.f32 1.442695, %v1231_v6  ;;  %2890 = vmatprep.subr.bf16.mxu0 %v3316_v7 }
 0x756   : > { %v3076_v14 = vpop.eup %3075  ;;  %v1244_v16 = vmul.f32 1.442695, %v1230_v9  ;;  %v1251_v17 = vsel %vm1199_vm14, %v3712_v12, 0.0  ;;  %v1542_v43 = vsel %vm456_vm0, %v1541_v42, 0.0 }
 0x757   : > { %3085 = vpow2.f32 %v1246_v13  ;;  %1252 = vadd.xlane.f32.xlu0 %v1251_v17  ;;  %v1248_v18 = vsel %vm1199_vm14, %v3076_v14, 0.0 }
 0x758   : > { %3087 = vpow2.f32 %v1244_v16  ;;  %1249 = vadd.xlane.f32.xlu1 %v1248_v18 }
 0x759   : > { %v3718_v24 = vpop.eup %3077 }
 0x75a   : > { %v3720_v19 = vpop.eup %3079  ;;  %v1257_v25 = vsel %vm1199_vm14, %v3718_v24, 0.0 }
 0x75b   : > { %1258 = vadd.xlane.f32.xlu0 %v1257_v25  ;;  %v1254_v27 = vsel %vm1199_vm14, %v3720_v19, 0.0 }
 0x75c   : > { %1255 = vadd.xlane.f32.xlu1 %v1254_v27 }
 0x75d   : > { %v3727_v26 = vpop.eup %3081 }
 0x75e   : > { %v3729_v28 = vpop.eup %3083  ;;  %v1263_v30 = vsel %vm1199_vm14, %v3727_v26, 0.0 }
 0x75f   : > { %1264 = vadd.xlane.f32.xlu0 %v1263_v30  ;;  %v1260_v31 = vsel %vm1199_vm14, %v3729_v28, 0.0 }
 0x760   : > { %1261 = vadd.xlane.f32.xlu1 %v1260_v31 }
 0x761   : > { %v3736_v33 = vpop.eup %3085 }
 0x762   : > { %v3738_v34 = vpop.eup %3087  ;;  %v1269_v38 = vsel %vm1199_vm14, %v3736_v33, 0.0 }
 0x763   : > { %1270 = vadd.xlane.f32.xlu0 %v1269_v38  ;;  %v1266_v11 = vsel %vm1199_vm14, %v3738_v34, 0.0 }
 0x764   : > { %1267 = vadd.xlane.f32.xlu1 %v1266_v11 }
 0x767   : > { %1538 = vadd.xlane.f32.xlu0 %v1537_v39  ;;  %v1559_v39 = vsub.s32 5, %v3552_v20 }
 0x76b   : > { %1543 = vadd.xlane.f32.xlu0 %v1542_v43 }
 0x775   : > { %3037 = vrot.lane.b32.xlu1 %v3671_v55, %s3320_s6  ;;  %v3769_v55 = vpack.c.bf16 %v2512_v48, %v2511_v47  ;;  %v1446_v47 = vld [vmem:[#allocation2 + $0x20] sm:$0xff]  ;;  %v1447_v48 = vld [vmem:[#allocation2 + $0x28] sm:$0xff] }
 0x777   : > { %2892 = vmatpush3.bf16.msra.mxu0 %v3769_v55 }
 0x7e4   : > { %v1253_v49 = vpop.xlane.xlu0 %1252 }
 0x7e5   : > { %v1250_v36 = vpop.xlane.xlu1 %1249 }
 0x7e6   : > { %3089 = vrcp.f32 %v1250_v36  ;;  %v1448_v36 = vld [vmem:[#allocation2 + $0x30] sm:$0xff] }
 0x7e7   : > { %3091 = vrcp.f32 %v1253_v49  ;;  %v2879_v49 = vpack.c.bf16 %v1447_v48, %v1446_v47 }
 0x7e8   : > { %v1259_v50 = vpop.xlane.xlu0 %1258 }
 0x7e9   : > { %v1256_v51 = vpop.xlane.xlu1 %1255 }
 0x7ea   : > { %3093 = vrcp.f32 %v1256_v51 }
 0x7eb   : > { %3095 = vrcp.f32 %v1259_v50  ;;  %v1449_v50 = vld [vmem:[#allocation2 + $0x38] sm:$0xff] }
 0x7ec   : > { %v1265_v52 = vpop.xlane.xlu0 %1264 }
 0x7ed   : > { %v1262_v53 = vpop.xlane.xlu1 %1261 }
 0x7ee   : > { %3097 = vrcp.f32 %v1262_v53 }
 0x7ef   : > { %3099 = vrcp.f32 %v1265_v52 }
 0x7f0   : > { %v3090_v54 = vpop.eup %3089  ;;  %v1271_v56 = vpop.xlane.xlu0 %1270 }
 0x7f1   : > { %v1268_v59 = vpop.xlane.xlu1 %1267  ;;  %v1273_v61 = vmul.f32 %v3090_v54, %v3076_v14  ;;  %v3092_v8 = vpop.eup %3091 }
 0x7f2   : > { %3101 = vrcp.f32 %v1268_v59  ;;  %v1275_v16 = vmul.f32 %v3092_v8, %v3712_v12 }
 0x7f3   : > { %2715 = vmatprep.mubr.msk.f32.mxu1 %vm1199_vm14, %v1273_v61  ;;  %3103 = vrcp.f32 %v1271_v56 }
 0x7f4   : > { %v1539_v62 = vpop.xlane.xlu0 %1538  ;;  %v3094_v15 = vpop.eup %3093 }
 0x7f5   : > { %v1540_v1 = vmul.f32 0.03125, %v1539_v62  ;;  %v3038_v2 = vpop.permute.xlu1 %3037  ;;  %v3096_v17 = vpop.eup %3095  ;;  %v1277_v23 = vmul.f32 %v3094_v15, %v3720_v19  ;;  %v1554_v19 = vsub.s32 2, %v3552_v20 }
 0x7f6   : > { %v3040_v3 = vunpack.i.h.bf16 %v3038_v2  ;;  %v3039_v4 = vunpack.i.l.bf16 %v3038_v2  ;;  %v1279_v27 = vmul.f32 %v3096_v17, %v3718_v24 }
 0x7f7   : > { %v1546_v9 = vmul.f32 %v1540_v1, %v1540_v1  ;;  %v1548_v24 = vsub.f32 %v3741_v37, %v1540_v1  ;;  %v1555_v42 = vrot.slane %v3557_v22, %v1554_v19 }
 0x7f8   : > { %v2875_v5 = vpack.c.bf16 %v3040_v3, %v3039_v4  ;;  %v1544_v6 = vpop.xlane.xlu0 %1543  ;;  %v3098_v25 = vpop.eup %3097 }
 0x7f9   : > { %v1545_v13 = vmul.f32 0.03125, %v1544_v6  ;;  %v3100_v29 = vpop.eup %3099  ;;  %v1281_v30 = vmul.f32 %v3098_v25, %v3729_v28 }
 0x7fa   : > { %2876 = vmatprep.subr.bf16.mxu1 %v2875_v5  ;;  %v1283_v12 = vmul.f32 %v3100_v29, %v3727_v26  ;;  %v1560_v26 = vrot.slane %v3557_v22, %v1559_v39 }
 0x7fb   : > { %v1547_v14 = vsub.f32 %v1545_v13, %v1546_v9  ;;  %2878 = vmatpush3.bf16.msra.mxu1 %v2875_v5 }
 0x7fc   : > { %v3102_v31 = vpop.eup %3101  ;;  %2880 = vmatprep.subr.bf16.mxu1 %v2879_v49 }
 0x7fd   : > { %v1549_v18 = vadd.f32 1e-05, %v1547_v14  ;;  %v3104_v38 = vpop.eup %3103  ;;  %v1285_v11 = vmul.f32 %v3102_v31, %v3738_v34  ;;  %v1570_v31 = vrot.slane %v3565_v32, %v1554_v19  ;;  %v1452_v32 = vsub.s32 7, %v3552_v20 }
 0x7fe   : > { %2716 = vmatmul.mubr.msk.f32.vlgmr.msra.gmra.mrb[14].mxu1 %vm1199_vm14, %v1275_v16  ;;  %v1287_v28 = vmul.f32 %v3104_v38, %v3736_v33  ;;  %v2883_v33 = vpack.c.bf16 %v1449_v50, %v1448_v36 }
 0x7ff   : > { %3105 = vrsqrt.f32 %v1549_v18  ;;  %2718 = vmatprep.mubr.msk.f32.mxu1 %vm1199_vm14, %v1277_v23  ;;  %2882 = vmatpush3.bf16.msra.mxu1 %v2879_v49  ;;  %v1453_v19 = vrot.slane %v3557_v22, %v1452_v32 }
 0x800   : > { %2884 = vmatprep.subr.bf16.mxu1 %v2883_v33 }
 0x802   : > { %2719 = vmatmul.mubr.msk.f32.gmra.mrb[16].mxu1 %vm1199_vm14, %v1279_v27 }
 0x803   : > { %2721 = vmatprep.mubr.msk.f32.mxu1 %vm1199_vm14, %v1281_v30  ;;  %2886 = vmatpush3.bf16.msra.mxu1 %v2883_v33 }
 0x804   : > { %2894 = vmatprep.subr.bf16.mxu1 %v3760_v46 }
 0x806   : > { %2722 = vmatmul.mubr.msk.f32.gmra.mrb[18].mxu1 %vm1199_vm14, %v1283_v12 }
 0x807   : > { %2724 = vmatprep.mubr.msk.f32.mxu1 %vm1199_vm14, %v1285_v11 }
 0x809   : > { %v3106_v43 = vpop.eup %3105 }
 0x80a   : > { %v1551_v0 = vmul.f32 %v3106_v43, %v1548_v24  ;;  %2725 = vmatmul.mubr.msk.f32.gmra.mrb[20].mxu1 %vm1199_vm14, %v1287_v28 }
 0x80c   : > { %v1556_v45 = vmul.f32 %v1555_v42, %v1551_v0 }
 0x80e   : > { %v1561_v34 = vadd.f32 %v1560_v26, %v1556_v45 }
 0x810   : > { %2747 = vmatmul.mubr.msk.f32.vlgmr.msra.gmra.mrb[8].mxu0 %vm456_vm0, %v1561_v34 }
 0x8d1   : > { %v2717_v51 = vpop.f32.mrb[14].mxu1 }
 0x8d2   : > { %v1384_v52 = vpop.f32.mrb[15].mxu1  ;;  %v1424_v53 = vmul.f32 %v2717_v51, %v3570_v35 }
 0x8d3   : > { %v1423_v54 = vmul.f32 %v3570_v35, %v1384_v52 }
 0x8d4   : > { %v1438_v1 = vsel %vm456_vm0, %v1424_v53, 0.0 }
 0x8d5   : > { %v2720_v56 = vpop.f32.mrb[16].mxu1  ;;  %v1431_v3 = vsel %vm456_vm0, %v1423_v54, 0.0 }
 0x8d6   : > { %v1426_v59 = vmul.f32 %v2720_v56, %v3580_v40  ;;  %v1394_v61 = vpop.f32.mrb[17].mxu1 }
 0x8d7   : > { %v1425_v62 = vmul.f32 %v3580_v40, %v1394_v61 }
 0x8d8   : > { %v1439_v2 = vsel %vm456_vm0, %v1426_v59, 0.0 }
 0x8d9   : > { %v1440_v4 = vadd.f32 %v1439_v2, %v1438_v1  ;;  %v1432_v5 = vsel %vm456_vm0, %v1425_v62, 0.0  ;;  %v2723_v6 = vpop.f32.mrb[18].mxu1 }
 0x8da   : > { %v1433_v8 = vadd.f32 %v1432_v5, %v1431_v3  ;;  %v1428_v9 = vmul.f32 %v2723_v6, %v3584_v41  ;;  %v1404_v13 = vpop.f32.mrb[19].mxu1 }
 0x8db   : > { %v1427_v15 = vmul.f32 %v3584_v41, %v1404_v13 }
 0x8dc   : > { %v1441_v14 = vsel %vm456_vm0, %v1428_v9, 0.0 }
 0x8dd   : > { %v1442_v16 = vadd.f32 %v1441_v14, %v1440_v4  ;;  %v1434_v17 = vsel %vm456_vm0, %v1427_v15, 0.0  ;;  %v2726_v18 = vpop.f32.mrb[20].mxu1 }
 0x8de   : > { %v1435_v23 = vadd.f32 %v1434_v17, %v1433_v8  ;;  %v1430_v25 = vmul.f32 %v2726_v18, %v3593_v44  ;;  %v1414_v27 = vpop.f32.mrb[21].mxu1 }
 0x8df   : > { %v1429_v29 = vmul.f32 %v3593_v44, %v1414_v27 }
 0x8e0   : > { %v1443_v30 = vsel %vm456_vm0, %v1430_v25, 0.0 }
 0x8e1   : > { %v1444_v12 = vadd.f32 %v1443_v30, %v1442_v16  ;;  %v1436_v38 = vsel %vm456_vm0, %v1429_v29, 0.0 }
 0x8e2   : > { %v1437_v11 = vadd.f32 %v1436_v38, %v1435_v23 }
 0x8e3   : > { %v1640_v39 = vpop.f32.mrb[8].mxu0 }
 0x8e4   : > { %v1641_v24 = vadd.f32 %v1640_v39, %v1570_v31  ;;  %2735 = vmatprep.mubr.msk.f32.mxu1 %vm456_vm0, %v1437_v11  ;;  %v2748_v28 = vpop.f32.mrb[9].mxu0 }
 0x8e5   : > { %2736 = vmatmul.mubr.msk.f32.vlgmr.msra.gmra.mrb[22].mxu1 %vm456_vm0, %v1444_v12 }
 0x8e6   : > { %v1725_v42 = vmul.f32 %v3570_v35, %v1641_v24  ;;  %2896 = vmatpush3.bf16.msra.mxu1 %v3760_v46  ;;  %v1727_v33 = vmul.f32 %v3584_v41, %v1641_v24  ;;  %v1728_v51 = vmul.f32 %v3593_v44, %v1641_v24 }
 0x8e7   : > { %2898 = vmatprep.subr.bf16.mxu1 %v3769_v55 }
 0x8e8   : > { %2764 = vmatprep.mubr.msk.f32.mxu0 %vm456_vm0, %v1725_v42 }
 0x8ea   : > { %2900 = vmatpush3.bf16.msra.mxu1 %v3769_v55 }
 0x9b8   : > { %v2737_v43 = vpop.f32.mrb[22].mxu1 }
 0x9b9   : > { %v1532_v0 = vadd.f32 %v2737_v43, %v1453_v19  ;;  %v1526_v26 = vpop.f32.mrb[23].mxu1 }
 0x9ba   : > { %v1527_v45 = vadd.f32 %v1526_v26, %v1453_v19 }
 0x9bb   : > { %v3825_v47 = vadd.f32 %v1532_v0, %v3614_v60  ;;  %v1726_v60 = vmul.f32 %v3580_v40, %v1641_v24 }
 0x9bc   : > { %v3822_v34 = vadd.f32 %v1527_v45, %v3609_v57 }
 0x9be   : > { %2757 = vmatprep.mubr.msk.f32.mxu1 %vm456_vm0, %v3822_v34 }
 0x9bf   : > { %2758 = vmatmul.mubr.msk.f32.vlgmr.msra.gmra.mrb[24].mxu1 %vm456_vm0, %v3825_v47 }
 0xa92   : > { %v2759_v46 = vpop.f32.mrb[24].mxu1 }
 0xa93   : > { %v1722_v20 = vadd.f32 %v2759_v46, %v1570_v31  ;;  %v1716_v55 = vpop.f32.mrb[25].mxu1 }
 0xa94   : > { %v1717_v22 = vadd.f32 %v1716_v55, %v1570_v31 }
 0xa96   : > { %v3046_v48 = vpack.i.bf16 %v1722_v20, %v1717_v22 }
 0xa98   : > { %3042 = vrot.lane.b32.xlu0 %v3046_v48, %s3319_s22 }
 0xb0a   : > { %v3043_v49 = vpop.permute.xlu0 %3042 }
 0xb0b   : > { %v3045_v36 = vunpack.i.h.bf16 %v3043_v49  ;;  %v3044_v57 = vunpack.i.l.bf16 %v3043_v49 }
 0xb0d   : > { %v2901_v50 = vpack.c.bf16 %v3045_v36, %v3044_v57  ;;  %v1999_v57 = vld [vmem:[#allocation2 + $0x40] sm:$0xff] }
 0xb0f   : > { %2903 = vmatprep.subr.msk.bf16.mxu0 %vm3680_vm13, %v2901_v50 }
 0xb10   : > { %2906 = vmatpush3.bf16.xpose.msk.msra.mxu0 %vm3680_vm13, %v2901_v50  ;;  %v2000_v50 = vld [vmem:[#allocation2 + $0x48] sm:$0xff] }
 0xb11   : > { %2911 = vmatprep.subr.bf16.mxu0 %v3316_v7 }
 0xb17   : > { %2765 = vmatmul.mubr.msk.f32.vlgmr.msra.gmra.mrb[10].mxu0 %vm456_vm0, %v1726_v60  ;;  %v2912_v60 = vpack.c.bf16 %v2000_v50, %v1999_v57 }
 0xb18   : > { %2767 = vmatprep.mubr.msk.f32.mxu0 %vm456_vm0, %v1727_v33  ;;  %v2001_v33 = vld [vmem:[#allocation2 + $0x50] sm:$0xff] }
 0xb19   : > { %2913 = vmatpush3.bf16.msra.mxu0 %v2912_v60 }
 0xb1a   : > { %2914 = vmatprep.subr.bf16.mxu0 %v3316_v7 }
 0xb1b   : > { %2768 = vmatmul.mubr.msk.f32.gmra.mrb[12].mxu0 %vm456_vm0, %v1728_v51  ;;  %v2002_v51 = vld [vmem:[#allocation2 + $0x58] sm:$0xff] }
 0xb1c   : > { %2788 = vmatprep.mubr.msk.f32.mxu0 %vm3317_vm1, %v3318_v10 }
 0xbea   : > { %v2766_v52 = vpop.f32.mrb[10].mxu0 }
 0xbeb   : > { %v1837_v63 = vmul.f32 0.35355338, %v2766_v52  ;;  %v1817_v53 = vpop.f32.mrb[11].mxu0  ;;  %v2915_v52 = vpack.c.bf16 %v2002_v51, %v2001_v33 }
 0xbec   : > { %v1836_v54 = vmul.f32 0.35355338, %v1817_v53  ;;  %v2082_v53 = vld [vmem:[%s4056_s4 + $0x8] sm:$0xff] }
 0xbed   : > { %v1843_v56 = vsel %vm1199_vm14, %v1837_v63, -inf  ;;  %2916 = vmatpush3.bf16.msra.mxu0 %v2915_v52 }
 0xbee   : > { %1844 = vmax.xlane.f32.xlu0 %v1843_v56  ;;  %v2769_v59 = vpop.f32.mrb[12].mxu0  ;;  %v1840_v61 = vsel %vm1199_vm14, %v1836_v54, -inf  ;;  %2923 = vmatprep.subr.bf16.mxu0 %v3316_v7 }
 0xbef   : > { %1841 = vmax.xlane.f32.xlu1 %v1840_v61  ;;  %v1827_v62 = vpop.f32.mrb[13].mxu0  ;;  %v1839_v2 = vmul.f32 0.35355338, %v2769_v59 }
 0xbf0   : > { %v1838_v1 = vmul.f32 0.35355338, %v1827_v62 }
 0xbf1   : > { %v1849_v4 = vsel %vm1199_vm14, %v1839_v2, -inf }
 0xbf2   : > { %v1846_v3 = vsel %vm1199_vm14, %v1838_v1, -inf }
 0xbf3   : > { %1847 = vmax.xlane.f32.xlu1 %v1846_v3 }
 0xbf7   : > { %1850 = vmax.xlane.f32.xlu1 %v1849_v4 }
 0xc7b   : > { %v1845_v5 = vpop.xlane.xlu0 %1844 }
 0xc7c   : > { %v1853_v6 = vsub.f32 %v1837_v63, %v1845_v5  ;;  %v1842_v8 = vpop.xlane.xlu1 %1841  ;;  %v2081_v63 = vld [vmem:[%s4056_s4] sm:$0xff] }
 0xc7d   : > { %v1852_v9 = vsub.f32 %v1836_v54, %v1842_v8  ;;  %v2918_v54 = vpack.c.bf16 %v2082_v53, %v2081_v63 }
 0xc7e   : > { %v1858_v13 = vmul.f32 1.442695, %v1853_v6 }
 0xc7f   : > { %v1856_v15 = vmul.f32 1.442695, %v1852_v9 }
 0xc80   : > { %3107 = vpow2.f32 %v1858_v13  ;;  %v1848_v14 = vpop.xlane.xlu1 %1847 }
 0xc81   : > { %3109 = vpow2.f32 %v1856_v15  ;;  %v1854_v16 = vsub.f32 %v1838_v1, %v1848_v14  ;;  %v2178_v14 = vld [vmem:[%s4057_s5] sm:$0xff] }
 0xc83   : > { %v1860_v17 = vmul.f32 1.442695, %v1854_v16  ;;  %v2179_v16 = vld [vmem:[%s4057_s5 + $0x8] sm:$0xff] }
 0xc84   : > { %v1851_v18 = vpop.xlane.xlu1 %1850 }
 0xc85   : > { %3111 = vpow2.f32 %v1860_v17  ;;  %v1855_v23 = vsub.f32 %v1839_v2, %v1851_v18  ;;  %v2180_v17 = vld [vmem:[%s4057_s5 + $0x10] sm:$0xff]  ;;  %v2924_v18 = vpack.c.bf16 %v2179_v16, %v2178_v14 }
 0xc87   : > { %v1862_v25 = vmul.f32 1.442695, %v1855_v23  ;;  %v2181_v23 = vld [vmem:[%s4057_s5 + $0x18] sm:$0xff] }
 0xc89   : > { %3113 = vpow2.f32 %v1862_v25  ;;  %v2927_v25 = vpack.c.bf16 %v2181_v23, %v2180_v17 }
 0xc8a   : > { %v3108_v27 = vpop.eup %3107 }
 0xc8b   : > { %v3110_v29 = vpop.eup %3109  ;;  %v1867_v30 = vsel %vm1199_vm14, %v3108_v27, 0.0 }
 0xc8c   : > { %1868 = vadd.xlane.f32.xlu0 %v1867_v30  ;;  %v1864_v31 = vsel %vm1199_vm14, %v3110_v29, 0.0 }
 0xc8d   : > { %1865 = vadd.xlane.f32.xlu1 %v1864_v31  ;;  %v2184_v31 = vld [vmem:[%s4057_s5 + $0x30] sm:$0xff] }
 0xc8f   : > { %v3112_v12 = vpop.eup %3111 }
 0xc90   : > { %v1870_v38 = vsel %vm1199_vm14, %v3112_v12, 0.0 }
 0xc91   : > { %1871 = vadd.xlane.f32.xlu1 %v1870_v38 }
 0xc93   : > { %v3114_v11 = vpop.eup %3113 }
 0xc94   : > { %v1873_v39 = vsel %vm1199_vm14, %v3114_v11, 0.0 }
 0xc95   : > { %1874 = vadd.xlane.f32.xlu0 %v1873_v39  ;;  %v2187_v39 = vld [vmem:[%s4057_s5 + $0x48] sm:$0xff] }
 0xca2   : > { %3047 = vrot.lane.b32.xlu1 %v3046_v48, %s3320_s6 }
 0xd19   : > { %v1869_v24 = vpop.xlane.xlu0 %1868 }
 0xd1a   : > { %v1866_v28 = vpop.xlane.xlu1 %1865 }
 0xd1b   : > { %3115 = vrcp.f32 %v1866_v28  ;;  %v2188_v28 = vld [vmem:[%s4057_s5 + $0x50] sm:$0xff] }
 0xd1c   : > { %3117 = vrcp.f32 %v1869_v24 }
 0xd1e   : > { %v1872_v42 = vpop.xlane.xlu1 %1871 }
 0xd1f   : > { %3119 = vrcp.f32 %v1872_v42  ;;  %v2189_v42 = vld [vmem:[%s4057_s5 + $0x58] sm:$0xff] }
 0xd22   : > { %v1875_v32 = vpop.xlane.xlu0 %1874  ;;  %v3048_v19 = vpop.permute.xlu1 %3047 }
 0xd23   : > { %3121 = vrcp.f32 %v1875_v32  ;;  %v3050_v43 = vunpack.i.h.bf16 %v3048_v19  ;;  %v3049_v0 = vunpack.i.l.bf16 %v3048_v19  ;;  %v2939_v32 = vpack.c.bf16 %v2189_v42, %v2188_v28  ;;  %v2190_v19 = vld [vmem:[%s4057_s5 + $0x60] sm:$0xff] }
 0xd25   : > { %v3116_v26 = vpop.eup %3115  ;;  %v2907_v45 = vpack.c.bf16 %v3050_v43, %v3049_v0  ;;  %v2191_v43 = vld [vmem:[%s4057_s5 + $0x68] sm:$0xff] }
 0xd26   : > { %v3118_v46 = vpop.eup %3117  ;;  %v1877_v20 = vmul.f32 %v3116_v26, %v3110_v29  ;;  %v2183_v29 = vld [vmem:[%s4057_s5 + $0x28] sm:$0xff]  ;;  %v2942_v0 = vpack.c.bf16 %v2191_v43, %v2190_v19 }
 0xd27   : > { %2908 = vmatprep.subr.bf16.mxu1 %v2907_v45  ;;  %v1879_v22 = vmul.f32 %v3118_v46, %v3108_v27  ;;  %v2182_v27 = vld [vmem:[%s4057_s5 + $0x20] sm:$0xff]  ;;  %v433_v26 = vld [vmem:[#allocation7 + $0x8] sm:$0x3] }
 0xd28   : > { %2910 = vmatpush3.bf16.msra.mxu1 %v2907_v45  ;;  %2774 = vmatprep.mubr.msk.f32.mxu1 %vm1199_vm14, %v1877_v20  ;;  %v2930_v30 = vpack.c.bf16 %v2183_v29, %v2182_v27  ;;  %v2006_v45 = vrot.slane %v433_v26, %v3555_v21  ;;  %v2193_v21 = vld [vmem:[%s4057_s5 + $0x78] sm:$0xff] }
 0xd29   : > { %v3120_v55 = vpop.eup %3119  ;;  %2917 = vmatprep.subr.bf16.mxu1 %v3316_v7 }
 0xd2a   : > { %v1881_v48 = vmul.f32 %v3120_v55, %v3112_v12  ;;  %v2185_v12 = vld [vmem:[%s4057_s5 + $0x38] sm:$0xff] }
 0xd2b   : > { %2775 = vmatmul.mubr.msk.f32.vlgmr.msra.gmra.mrb[26].mxu1 %vm1199_vm14, %v1879_v22  ;;  %v2933_v38 = vpack.c.bf16 %v2185_v12, %v2184_v31 }
 0xd2c   : > { %2777 = vmatprep.mubr.msk.f32.mxu1 %vm1199_vm14, %v1881_v48  ;;  %2919 = vmatpush3.bf16.msra.mxu1 %v2918_v54  ;;  %v2527_v48 = vld [vmem:[%s4059_s7] ss:$0 sm:$0xff] }
 0xd2d   : > { %v3122_v49 = vpop.eup %3121  ;;  %2920 = vmatprep.subr.bf16.mxu1 %v3316_v7 }
 0xd2e   : > { %v1883_v36 = vmul.f32 %v3122_v49, %v3114_v11  ;;  %v2186_v11 = vld [vmem:[%s4057_s5 + $0x40] sm:$0xff] }
 0xd2f   : > { %v2936_v24 = vpack.c.bf16 %v2187_v39, %v2186_v11 }
 0xd30   : > { %2778 = vmatmul.mubr.msk.f32.gmra.mrb[28].mxu1 %vm1199_vm14, %v1883_v36 }
 0xd31   : > { %2799 = vmatprep.mubr.msk.f32.mxu1 %vm3317_vm1, %v3318_v10 }
 0xdfe   : > { %v2776_v56 = vpop.f32.mrb[26].mxu1 }
 0xdff   : > { %v1988_v59 = vmul.f32 %v2776_v56, %v3580_v40  ;;  %v1968_v61 = vpop.f32.mrb[27].mxu1 }
 0xe00   : > { %v1987_v62 = vmul.f32 %v3570_v35, %v1968_v61  ;;  %v2083_v35 = vld [vmem:[%s4056_s4 + $0x10] sm:$0xff] }
 0xe01   : > { %v1992_v1 = vsel %vm456_vm0, %v1988_v59, 0.0  ;;  %v2197_v59 = vrot.slane %v433_v26, %v3638_v58 }
 0xe02   : > { %v1991_v2 = vsel %vm456_vm0, %v1987_v62, 0.0 }
 0xe03   : > { %v1993_v3 = vadd.f32 %v1992_v1, %v1991_v2  ;;  %v2779_v4 = vpop.f32.mrb[28].mxu1 }
 0xe04   : > { %v1978_v5 = vpop.f32.mrb[29].mxu1  ;;  %v1990_v6 = vmul.f32 %v2779_v4, %v3593_v44  ;;  %v2084_v44 = vld [vmem:[%s4056_s4 + $0x18] sm:$0xff] }
 0xe05   : > { %v1989_v8 = vmul.f32 %v3584_v41, %v1978_v5  ;;  %v2921_v41 = vpack.c.bf16 %v2084_v44, %v2083_v35 }
 0xe06   : > { %v1996_v15 = vsel %vm456_vm0, %v1990_v6, 0.0 }
 0xe07   : > { %v1994_v9 = vsel %vm456_vm0, %v1989_v8, 0.0  ;;  %2922 = vmatpush3.bf16.msra.mxu1 %v2921_v41 }
 0xe08   : > { %v1995_v13 = vadd.f32 %v1994_v9, %v1993_v3 }
 0xe0a   : > { %v1997_v40 = vadd.f32 %v1996_v15, %v1995_v13 }
 0xe0c   : > { %2789 = vmatmul.mubr.msk.f32.vlgmr.msra.gmra.mrb[14].mxu0 %vm456_vm0, %v1997_v40 }
 0xe0d   : > { %2840 = vmatprep.mubr.msk.f32.mxu0 %vm3317_vm1, %v3318_v10  ;;  %2925 = vmatpush3.bf16.msra.mxu0 %v2924_v18 }
 0xe0e   : > { %2926 = vmatprep.subr.bf16.mxu0 %v3316_v7 }
 0xe11   : > { %2928 = vmatpush3.bf16.msra.mxu0 %v2927_v25 }
 0xe12   : > { %2929 = vmatprep.subr.bf16.mxu0 %v3316_v7 }
 0xe15   : > { %2931 = vmatpush3.bf16.msra.mxu0 %v2930_v30 }
 0xe16   : > { %2932 = vmatprep.subr.bf16.mxu0 %v3316_v7 }
 0xe19   : > { %2934 = vmatpush3.bf16.msra.mxu0 %v2933_v38 }
 0xe1a   : > { %2935 = vmatprep.subr.bf16.mxu0 %v3316_v7 }
 0xe1d   : > { %2937 = vmatpush3.bf16.msra.mxu0 %v2936_v24 }
 0xe1e   : > { %2938 = vmatprep.subr.bf16.mxu0 %v3316_v7 }
 0xe21   : > { %2940 = vmatpush3.bf16.msra.mxu0 %v2939_v32 }
 0xe22   : > { %2941 = vmatprep.subr.bf16.mxu0 %v3316_v7 }
 0xe25   : > { %2943 = vmatpush3.bf16.msra.mxu0 %v2942_v0 }
 0xe26   : > { %2944 = vmatprep.subr.bf16.mxu0 %v3316_v7  ;;  %v2192_v7 = vld [vmem:[%s4057_s5 + $0x70] sm:$0xff] }
 0xedf   : > { %v2076_v46 = vpop.f32.mrb[14].mxu0 }
 0xee0   : > { %v2077_v20 = vadd.f32 %v2076_v46, %v2006_v45  ;;  %v2790_v55 = vpop.f32.mrb[15].mxu0 }
 0xee2   : > { %v2080_v22 = vadd.f32 %v2077_v20, %v3741_v37  ;;  %v2945_v37 = vpack.c.bf16 %v2193_v21, %v2192_v7 }
 0xee4   : > { %2800 = vmatmul.mubr.msk.f32.vlgmr.msra.gmra.mrb[30].mxu1 %vm456_vm0, %v2080_v22  ;;  %2946 = vmatpush3.bf16.msra.mxu0 %v2945_v37 }
 0xee5   : > { %2802 = vmatprep.mubr.msk.f32.mxu1 %vm3317_vm1, %v3318_v10 }
 0xee8   : > { %2803 = vmatmul.mubr.msk.f32.gmra.mrb[32].mxu1 %vm456_vm0, %v3822_v34 }
 0xee9   : > { %2805 = vmatprep.mubr.msk.f32.mxu1 %vm3317_vm1, %v3318_v10 }
 0xeec   : > { %2806 = vmatmul.mubr.msk.f32.gmra.mrb[34].mxu1 %vm456_vm0, %v3825_v47 }
 0xfb7   : > { %v2161_v49 = vpop.f32.mrb[30].mxu1 }
 0xfb8   : > { %v2162_v36 = vadd.f32 %v2527_v48, %v2161_v49  ;;  %v2801_v57 = vpop.f32.mrb[31].mxu1 }
 0xfba   : > { %v2175_v50 = vmax.f32 %v2162_v36, 0.0 }
 0xfbb   : > { %v2166_v60 = vpop.f32.mrb[32].mxu1 }
 0xfbc   : > { %v2167_v33 = vadd.f32 %v2527_v48, %v2166_v60  ;;  %v2804_v51 = vpop.f32.mrb[33].mxu1  ;;  %2841 = vmatmul.mubr.f32.vlgmr.msra.gmra.mrb[16].mxu0 %v2175_v50 }
 0xfbd   : > { %2843 = vmatprep.mubr.msk.f32.mxu0 %vm3317_vm1, %v3318_v10 }
 0xfbe   : > { %v2176_v52 = vmax.f32 %v2167_v33, 0.0 }
 0xfbf   : > { %v2171_v63 = vpop.f32.mrb[34].mxu1 }
 0xfc0   : > { %v2172_v53 = vadd.f32 %v2527_v48, %v2171_v63  ;;  %v2807_v54 = vpop.f32.mrb[35].mxu1  ;;  %2844 = vmatmul.mubr.f32.gmra.mrb[18].mxu0 %v2176_v52 }
 0xfc1   : > { %2846 = vmatprep.mubr.msk.f32.mxu0 %vm3317_vm1, %v3318_v10 }
 0xfc2   : > { %v2177_v56 = vmax.f32 %v2172_v53, 0.0 }
 0xfc4   : > { %2847 = vmatmul.mubr.f32.gmra.mrb[20].mxu0 %v2177_v56 }
0x108f   : > { %v2264_v61 = vpop.f32.mrb[16].mxu0 }
0x1090   : > { %v2265_v62 = vadd.f32 %v2264_v61, %v2197_v59  ;;  %v2842_v1 = vpop.f32.mrb[17].mxu0 }
0x1092   : > { %v2278_v2 = vadd.f32 %v2265_v62, %v2080_v22 }
0x1093   : > { %v2269_v10 = vpop.f32.mrb[18].mxu0 }
0x1094   : > { %v2270_v58 = vadd.f32 %v2269_v10, %v2197_v59  ;;  %v2845_v3 = vpop.f32.mrb[19].mxu0  ;;  %2281 = vst.msk [vmem:[%s411_s30] sm:$0xff] %vm456_vm0, %v2278_v2 }
0x1095   : > { %3220 = shalt.err (!%p3217_p11)
}
0x1096   : > { %s3221_s18 = scalar_lea.hbm %s3970_s19, 128  ;;  %s3225_s25 = scalar_lea.hbm %s4061_s9, 256 }
0x1097   : > { %p3222_p13 = scmp.ne.s32.totalorder %s3970_s19, %s3221_s18  ;;  %p3226_p6 = scmp.lt.u32.totalorder %s3970_s19, %s4061_s9 }
0x1098   : > { %p3227_p5 = scmp.lt.u32.totalorder %s3225_s25, %s3221_s18  ;;  %p3229_p12 = scmp.lt.u32.totalorder %s3221_s18, %s3970_s19 }
0x1099   : > { %p3223_p1 = pnand %p3222_p13, %p4088_p10 }
0x109a   : > { %p3228_p9 = por %p3227_p5, %p3226_p6 }
0x109b   : > { %p3224_p0 = pneg %p3223_p1 }
0x109c   : > { %p3230_p2 = por %p3229_p12, %p3228_p9 }
0x109e   : > { %p3231_p3 = pnand %p3230_p2, %p3224_p0 }
0x10a0   : > { %3234 = shalt.err (!%p3231_p3)
}
0x10a1   : > { %2959 = dma.vmem_to_hbm [thread:$0]  (%p4088_p10), %s3972_s12, 128, %s3970_s19, %s2285_s24   ;;  %v2279_v4 = vadd.f32 %v2270_v58, %v3822_v34  ;;  %v2274_v5 = vpop.f32.mrb[20].mxu0 }
0x10a2   : > { %s2539_s6 = sshll.u32 %s3401_s17, 8  ;;  %s418_s15 = scalar_lea.vmem [#allocation9], %s2464_s28  ;;  %v2275_v6 = vadd.f32 %v2274_v5, %v2197_v59  ;;  %v2848_v8 = vpop.f32.mrb[21].mxu0 }
0x10a3   : > { %s2316_s21 = sshll.u32 %s418_s15, 4  ;;  %2282 = vst.msk [vmem:[%s418_s15] sm:$0xff] %vm456_vm0, %v2279_v4  ;;  %s4005_s18 = scalar_lea.hbm %s4062_s10, %s2539_s6  ;;  %s4007_s21 = int_to_ptr.vmem [resolvable:$true] %s2316_s21 }
0x10a4   : > { %v2280_v34 = vadd.f32 %v2275_v6, %v3825_v47  ;;  %s2290_s17 = scalar_lea.sflag [#allocation10], %s3961_s29  ;;  %s3235_s12 = scalar_lea.vmem %s4007_s21, 256 }
0x10a5   : > { %p3236_p4 = scmp.ne.s32.totalorder %s4007_s21, %s3235_s12  ;;  %s3322_s28 = smov [#allocation9]  }
0x10a6   : > { %2283 = vst.msk [vmem:[%s418_s15 + $0x8] sm:$0xff] %vm456_vm0, %v2280_v34  ;;  %s3239_s19 = sshll.u32 %s3322_s28, 4  ;;  %s3240_s19 = int_to_ptr.vmem [resolvable:$false] %s3239_s19 }
0x10a7   : > { %p3237_p7 = pnand %p3236_p4, %p4088_p10  ;;  %s3241_s24 = scalar_lea.vmem %s3240_s19, 512 }
0x10a8   : > { %p3242_p11 = scmp.lt.s32.totalorder %s4007_s21, %s3240_s19  ;;  %p3243_p13 = scmp.lt.s32.totalorder %s3241_s24, %s3235_s12 }
0x10a9   : > { %p3238_p8 = pneg %p3237_p7 }
0x10aa   : > { %p3244_p1 = por %p3243_p13, %p3242_p11 }
0x10ac   : > { %p3245_p0 = pnand %p3244_p1, %p3238_p8 }
0x10ae   : > { %3248 = shalt.err (!%p3245_p0)
}
0x10af   : > { %s3249_s27 = scalar_lea.hbm %s4005_s18, 256  ;;  %s3253_s30 = scalar_lea.hbm %s4062_s10, 512 }
0x10b0   : > { %p3250_p6 = scmp.ne.s32.totalorder %s4005_s18, %s3249_s27  ;;  %p3254_p12 = scmp.lt.u32.totalorder %s4005_s18, %s4062_s10 }
0x10b1   : > { %p3255_p2 = scmp.lt.u32.totalorder %s3253_s30, %s3249_s27  ;;  %p3257_p4 = scmp.lt.u32.totalorder %s3249_s27, %s4005_s18 }
0x10b2   : > { %p3251_p5 = pnand %p3250_p6, %p4088_p10 }
0x10b3   : > { %p3256_p3 = por %p3255_p2, %p3254_p12 }
0x10b4   : > { %p3252_p9 = pneg %p3251_p5 }
0x10b5   : > { %p3258_p7 = por %p3257_p4, %p3256_p3 }
0x10b7   : > { %p3259_p8 = pnand %p3258_p7, %p3252_p9 }
0x10b9   : > { %3262 = shalt.err (!%p3259_p8)
}
0x10ba   : > { %s3323_s15 = smov 128   ;;  %s3324_s26 = smov 8  }
0x10bb   : > { %2960 = dma.vmem_to_hbm [thread:$0]  (%p4088_p10), %s4007_s21, 256, %s4005_s18, %s2290_s17, %s3323_s15, %s3323_s15, %s3324_s26  }
0x10bc PF: > { %s4089_s11 = sld [smem:[#allocation18_spill]]  ;;  %p2986_p11 = scmp.ge.s32.totalorder %s3309_s16, 2 }
0x10bd   : > { %s2331_s12 = sand.u32 1, %s3297_s13  }
0x10be   : > { %s2332_s28 = scalar_lea.sflag [#allocation4], %s2331_s12 }
0x10c2   : > { %p4090_p13 = scmp.ne.s32.totalorder %s4089_s11, 0 }
0x10c4   : > { %p2974_p1 = pnand %p2986_p11, %p4090_p13 }
0x10c6   : > { %3288 = dma.done.wait (!%p2974_p1), %s2332_s28, 128  }
0x10c7   : > { %3290 = vsyncadd (!%p2974_p1), %s2332_s28, 4294967168  ;;  %s2341_s19 = scalar_lea.sflag [#allocation10], %s2331_s12 }
0x10c8   : > { %3292 = dma.done.wait (!%p2974_p1), %s2341_s19, 256  }
0x10c9   : > { %3294 = vsyncadd (!%p2974_p1), %s2341_s19, 4294967040  ;;  %s4091_s16 = sld [smem:[#allocation16_spill]]  ;;  %s4092_s24 = sld [smem:[#allocation15_spill]] }
0x10ca   : > { %s4093_s15 = sld [smem:[#allocation17_spill]]  ;;  %s4094_s13 = smov %s3301_s14 }
0x10cf   : > { %p26_p10 = scmp.ge.s32.totalorder %s4091_s16, 4   ;;  %s4095_s14 = smov %s4092_s24 }
0x10d1   :  { %28 = sbr.rel (!%p26_p10) target bundleno = 9 (0x9), region = 128 }
0x10d8   :  { %2346 = vsyncpa [#allocation3], 1 }
0x10d9   :  { %2348 = vsyncpa [#allocation3 + $0x1], 1 }
0x10da   :  { %2349 = vsyncpa [#allocation6], 1 }
0x10db   :  { %2350 = vsyncpa [#allocation4], 1 }
0x10dc   :  { %2352 = vsyncpa [#allocation4 + $0x1], 1 }
0x10dd   :  { %2353 = vsyncpa [#allocation10], 1 }
0x10de   :  { %2355 = vsyncpa [#allocation10 + $0x1], 1 }

</bundles_post_ra>
